<compile_context>
chip_gen: v6e
topology: v6e:2x2x1
jax: 0.10.0
libtpu: 0.0.40
codegen_flags: <defaults>
</compile_context>

<pallas_src>
import functools

import jax
import jax.numpy as jnp
import numpy as np
from jax import lax
from jax.experimental import pallas as pl
from jax.experimental.pallas import tpu as pltpu


def _round_up(x, m):
    return ((x + m - 1) // m) * m


def _vmem_capacity_bytes():
    """Physical VMEM of the current chip; conservative 64 MiB (v7x) fallback."""
    try:
        info = pltpu.get_tpu_info()
        cap = getattr(info, "vmem_capacity_bytes", None)
        if cap:
            return int(cap)
    except Exception:
        pass
    return 64 << 20


def _lstm_recurrent_kernel(gx_ref, whh_hbm_ref, h0_ref, c0_ref,
                           y_ref, hT_ref, cT_ref,
                           whh_vmem, *, hidden_size, tu, unroll):
    """One grid step = TU timesteps of the serial recurrence for one layer.

    gx_ref      : (TU, B, 4H) bf16  precomputed x-projection (+ biases) block
    whh_hbm_ref : (H, 4H) bf16      recurrent weight in HBM (copied once)
    h0/c0_ref   : (B, H)  f32       initial state (read on grid step 0 only)
    y_ref       : (TU, B, H) f32    per-timestep hidden outputs
    hT/cT_ref   : (B, H)  f32       resident output blocks, double as the h/c carry
    whh_vmem    : (H, 4H) bf16      VMEM scratch holding Whh^T (single-buffered)
    """
    H = hidden_size
    blk = pl.program_id(0)

    @pl.when(blk == 0)
    def _init():
        pltpu.sync_copy(whh_hbm_ref, whh_vmem)      # weight resident once, no 2nd buffer
        hT_ref[...] = h0_ref[...]
        cT_ref[...] = c0_ref[...]

    whh = whh_vmem[...]                             # (H, 4H) bf16

    def step(u, carry):
        h, c = carry                                # f32 carries
        # Only the recurrent matmul remains in the serial loop; bf16 MXU, f32 acc.
        gates = jnp.dot(h.astype(jnp.bfloat16), whh,
                        preferred_element_type=jnp.float32)
        gates = gates + gx_ref[u].astype(jnp.float32)
        i_t = jax.nn.sigmoid(gates[:, 0 * H:1 * H])
        f_t = jax.nn.sigmoid(gates[:, 1 * H:2 * H])
        g_t = jnp.tanh(gates[:, 2 * H:3 * H])
        o_t = jax.nn.sigmoid(gates[:, 3 * H:4 * H])
        cy = c * f_t + i_t * g_t
        hy = o_t * jnp.tanh(cy)
        y_ref[u] = hy
        return hy, cy

    h_new, c_new = lax.fori_loop(0, tu, step, (hT_ref[...], cT_ref[...]),
                                 unroll=unroll)
    hT_ref[...] = h_new
    cT_ref[...] = c_new


def lstm_layer(x_tbd, wxh_t_bf16, whh_t_bf16, bias_f32, h0, c0, *, max_tu=32):
    """One LSTM layer over a full (already padded) sequence.

    x_tbd : (T, B, Din) f32 time-major        wxh_t : (Din, 4H) bf16
    whh_t : (H, 4H) bf16                      bias  : (1, 4H)  f32 (bxh + bhh folded)
    h0,c0 : (B, H) f32
    returns y: (T, B, H) f32, h_T: (B, H), c_T: (B, H)
    """
    T, B, Din = x_tbd.shape
    H = h0.shape[1]

    # ---- Hoisted non-recurrent projection: one MXU-friendly bf16 GEMM, M = T*B. ----
    gates_x = jnp.dot(x_tbd.reshape(T * B, Din).astype(jnp.bfloat16), wxh_t_bf16,
                      preferred_element_type=jnp.float32) + bias_f32
    gates_x = gates_x.astype(jnp.bfloat16).reshape(T, B, 4 * H)   # bf16 in HBM

    # ---- VMEM-aware TU selection and vmem limit (v7x-safe). ----
    cap = _vmem_capacity_bytes()
    whh_bytes = H * 4 * H * 2                       # bf16, single copy in scratch
    state_bytes = 8 * B * H * 4                     # h0/c0 (2 buffers) + hT/cT blocks
    per_t = 2 * (B * 4 * H * 2 + B * H * 4)         # double-buffered gx(bf16) + y(f32)
    budget = max(int(0.5 * cap) - whh_bytes - state_bytes, per_t)
    tu = 1
    for cand in range(1, min(T, max_tu) + 1):       # largest divisor of T that fits
        if T % cand == 0 and cand * per_t <= budget:
            tu = cand
    num_blocks = T // tu
    unroll = min(tu, 8)                             # cap unroll (vreg pressure / spills)

    need = whh_bytes + state_bytes + tu * per_t
    vmem_limit = int(min(int(0.9 * cap), max(16 << 20, int(1.5 * need))))

    kernel = functools.partial(_lstm_recurrent_kernel,
                               hidden_size=H, tu=tu, unroll=unroll)

    y, hT, cT = pl.pallas_call(
        kernel,
        out_shape=(
            jax.ShapeDtypeStruct((T, B, H), jnp.float32),
            jax.ShapeDtypeStruct((B, H), jnp.float32),
            jax.ShapeDtypeStruct((B, H), jnp.float32),
        ),
        grid_spec=pltpu.PrefetchScalarGridSpec(
            num_scalar_prefetch=0,
            grid=(num_blocks,),
            in_specs=[
                pl.BlockSpec((tu, B, 4 * H), lambda t: (t, 0, 0)),   # gates_x block
                pl.BlockSpec(memory_space=pl.ANY),                   # Whh^T (copied once)
                pl.BlockSpec((B, H), lambda t: (0, 0)),              # h0
                pl.BlockSpec((B, H), lambda t: (0, 0)),              # c0
            ],
            out_specs=[
                pl.BlockSpec((tu, B, H), lambda t: (t, 0, 0)),       # y block
                pl.BlockSpec((B, H), lambda t: (0, 0)),              # h_T (resident carry)
                pl.BlockSpec((B, H), lambda t: (0, 0)),              # c_T (resident carry)
            ],
            scratch_shapes=[
                pltpu.VMEM((H, 4 * H), jnp.bfloat16),                # Whh^T resident
            ],
        ),
        compiler_params=pltpu.CompilerParams(
            dimension_semantics=("arbitrary",),                      # serial recurrence
            vmem_limit_bytes=vmem_limit),
    )(gates_x, whh_t_bf16, h0, c0)
    return y, hT, cT


def init_simple_lstm_params(key, input_size, hidden_size, num_layers):
    """Matches LSTMCell.reset_parameters: U(-1/sqrt(H), 1/sqrt(H)) for all params."""
    std = 1.0 / np.sqrt(hidden_size)
    params = []
    for layer in range(num_layers):
        d_in = input_size if layer == 0 else hidden_size
        key, k1, k2, k3, k4 = jax.random.split(key, 5)
        wxh = jax.random.uniform(k1, (4 * hidden_size, d_in), jnp.float32, -std, std)
        bxh = jax.random.uniform(k2, (4 * hidden_size,), jnp.float32, -std, std)
        whh = jax.random.uniform(k3, (4 * hidden_size, hidden_size), jnp.float32, -std, std)
        bhh = jax.random.uniform(k4, (4 * hidden_size,), jnp.float32, -std, std)
        params.append(dict(
            wxh_t=wxh.T,                          # (d_in, 4H)
            whh_t=whh.T,                          # (H, 4H)
            bias=(bxh + bhh).reshape(1, -1),      # (1, 4H), folded once
            bxh=bxh.reshape(1, -1),               # kept for the pure-JAX reference
            bhh=bhh.reshape(1, -1),
        ))
    return params


def _prepare_layer(p, hidden_size, hidden_pad, pad_input_rows):
    """Pad each gate chunk to H_pad along the 4H axis, pad recurrent/hidden input rows,
    and cast MXU operands to bf16.  Zero padding keeps the math exact."""
    H, Hp = hidden_size, hidden_pad
    wxh_t, whh_t, bias = p["wxh_t"], p["whh_t"], p["bias"]

    def pad_gate_cols(w):                          # (..., 4H) -> (..., 4H_pad), per gate
        lead = w.shape[:-1]
        w4 = w.reshape(lead + (4, H))
        w4 = jnp.pad(w4, [(0, 0)] * len(lead) + [(0, 0), (0, Hp - H)])
        return w4.reshape(lead + (4 * Hp,))

    wxh_tp = pad_gate_cols(wxh_t)                  # (d_in, 4H_pad)
    if pad_input_rows:                             # layer input is a padded hidden state
        wxh_tp = jnp.pad(wxh_tp, ((0, Hp - wxh_tp.shape[0]), (0, 0)))
    whh_tp = pad_gate_cols(whh_t)                  # (H, 4H_pad)
    whh_tp = jnp.pad(whh_tp, ((0, Hp - H), (0, 0)))
    bias_p = pad_gate_cols(bias)                   # (1, 4H_pad)
    return (wxh_tp.astype(jnp.bfloat16), whh_tp.astype(jnp.bfloat16),
            bias_p.astype(jnp.float32))


def simple_lstm_forward(params, x_btd, hidden_size, dropout_p=0.0, initial_states=None):
    """Forward of the LSTMCell stack.

    x_btd: (B, T, D).  Returns (outs (B, T, H), (h_n (L, B, H), c_n (L, B, H))).
    """
    B, T, D = x_btd.shape
    L = len(params)
    H = hidden_size
    Bp = _round_up(B, 8)                           # sublane-aligned batch
    Hp = _round_up(H, 128)                         # lane-aligned gate slices

    if initial_states is None:
        h0 = jnp.zeros((L, B, H), jnp.float32)
        c0 = jnp.zeros((L, B, H), jnp.float32)
    else:
        h0, c0 = initial_states

    h0p = jnp.pad(h0.astype(jnp.float32), ((0, 0), (0, Bp - B), (0, Hp - H)))
    c0p = jnp.pad(c0.astype(jnp.float32), ((0, 0), (0, Bp - B), (0, Hp - H)))
    xp = jnp.pad(x_btd.astype(jnp.float32), ((0, Bp - B), (0, 0), (0, 0)))

    # TODO(synk): stochastic inter-layer dropout (p > 0) not implemented; p=0 is identity.
    seq = jnp.transpose(xp, (1, 0, 2))             # (T, Bp, D) time-major
    h_finals, c_finals = [], []
    for l in range(L):
        wxh_tp, whh_tp, bias_p = _prepare_layer(params[l], H, Hp, pad_input_rows=(l > 0))
        seq, hT, cT = lstm_layer(seq, wxh_tp, whh_tp, bias_p, h0p[l], c0p[l])
        h_finals.append(hT[:B, :H])
        c_finals.append(cT[:B, :H])

    outs = jnp.transpose(seq, (1, 0, 2))[:B, :, :H]   # (B, T, H)
    return outs, (jnp.stack(h_finals), jnp.stack(c_finals))


def _reference_forward(params, x_btd, hidden_size):
    """Pure-JAX f32 reference mirroring the PyTorch LSTMCell loop."""
    B, T, D = x_btd.shape
    L = len(params)
    H = hidden_size
    h = [jnp.zeros((B, H), jnp.float32) for _ in range(L)]
    c = [jnp.zeros((B, H), jnp.float32) for _ in range(L)]
    outs = []
    for t in range(T):
        for l in range(L):
            inp = x_btd[:, t, :] if l == 0 else h[l - 1]
            p = params[l]
            gates = inp @ p["wxh_t"] + p["bxh"] + h[l] @ p["whh_t"] + p["bhh"]
            i_t = jax.nn.sigmoid(gates[:, 0 * H:1 * H])
            f_t = jax.nn.sigmoid(gates[:, 1 * H:2 * H])
            g_t = jnp.tanh(gates[:, 2 * H:3 * H])
            o_t = jax.nn.sigmoid(gates[:, 3 * H:4 * H])
            c[l] = c[l] * f_t + i_t * g_t
            h[l] = o_t * jnp.tanh(c[l])
        outs.append(h[L - 1])
    return jnp.stack(outs, 1), (jnp.stack(h), jnp.stack(c))


if __name__ == "__main__":
    B, T = 2, 8
    input_size, hidden_size, num_layers = 16, 32, 2
    dropout = 0.0

    key = jax.random.PRNGKey(0)
    kx, kp = jax.random.split(key)
    x = jax.random.normal(kx, (B, T, input_size), jnp.float32)
    params = init_simple_lstm_params(kp, input_size, hidden_size, num_layers)

    outs, (h_n, c_n) = simple_lstm_forward(params, x, hidden_size, dropout)
    jax.block_until_ready((outs, h_n, c_n))

    ref_outs, (ref_h, ref_c) = _reference_forward(params, x, hidden_size)
    # bf16 MXU operands (f32 accumulation) -> loosened tolerance vs. the f32 reference.
    np.testing.assert_allclose(np.asarray(outs), np.asarray(ref_outs), rtol=3e-2, atol=3e-2)
    np.testing.assert_allclose(np.asarray(h_n), np.asarray(ref_h), rtol=3e-2, atol=3e-2)
    np.testing.assert_allclose(np.asarray(c_n), np.asarray(ref_c), rtol=3e-2, atol=3e-2)

    assert outs.shape == (B, T, hidden_size)
    assert h_n.shape == (num_layers, B, hidden_size)
    assert c_n.shape == (num_layers, B, hidden_size)
    print("KERNEL_OK")
</pallas_src>

<mosaic_0001>
module attributes {stable_mosaic.version = 11 : i64} {
  func.func @_lstm_recurrent_kernel(%arg0: i32, %arg1: memref<8x8x512xbf16, #tpu.memory_space<vmem>>, %arg2: memref<128x512xbf16, #tpu.memory_space<any>>, %arg3: memref<8x128xf32, #tpu.memory_space<vmem>>, %arg4: memref<8x128xf32, #tpu.memory_space<vmem>>, %arg5: memref<8x8x128xf32, #tpu.memory_space<vmem>>, %arg6: memref<8x128xf32, #tpu.memory_space<vmem>>, %arg7: memref<8x128xf32, #tpu.memory_space<vmem>>, %arg8: memref<128x512xbf16, #tpu.memory_space<vmem>>) attributes {dimension_semantics = [#tpu.dimension_semantics<arbitrary>], iteration_bounds = array<i64: 1>, scalar_prefetch = 0 : i64, scratch_operands = 1 : i64, tpu.core_type = #tpu.core_type<tc>, window_params = [{transform_indices = @transform_0, window_bounds = array<i64: 8, 8, 512>}, {}, {pipeline_mode = #tpu.pipeline_mode<synchronous>, transform_indices = @transform_2, window_bounds = array<i64: 8, 128>}, {pipeline_mode = #tpu.pipeline_mode<synchronous>, transform_indices = @transform_3, window_bounds = array<i64: 8, 128>}, {transform_indices = @transform_4, window_bounds = array<i64: 8, 8, 128>}, {pipeline_mode = #tpu.pipeline_mode<synchronous>, transform_indices = @transform_5, window_bounds = array<i64: 8, 128>}, {pipeline_mode = #tpu.pipeline_mode<synchronous>, transform_indices = @transform_6, window_bounds = array<i64: 8, 128>}]} {
    %c0_i32 = arith.constant 0 : i32
    %0 = arith.cmpi eq, %arg0, %c0_i32 : i32
    %1 = arith.extui %0 : i1 to i32
    %c0_i32_0 = arith.constant 0 : i32
    %2 = arith.cmpi ne, %1, %c0_i32_0 : i32
    scf.if %2 {
      "tpu.region"() ({
        %300 = tpu.sem_alloc : memref<!tpu.dma_semaphore, #tpu.memory_space<semaphore_mem>>
        tpu.enqueue_dma source(%arg2 : memref<128x512xbf16, #tpu.memory_space<any>>) target(%arg8 : memref<128x512xbf16, #tpu.memory_space<vmem>>) target_semaphore(%300 : memref<!tpu.dma_semaphore, #tpu.memory_space<semaphore_mem>>)
        tpu.wait_dma2 semaphore(%300 : memref<!tpu.dma_semaphore, #tpu.memory_space<semaphore_mem>>) src(%arg2 : memref<128x512xbf16, #tpu.memory_space<any>>) dst(%arg8 : memref<128x512xbf16, #tpu.memory_space<vmem>>)
        tpu.yield
      }) : () -> ()
      %c0_74 = arith.constant 0 : index
      %c0_75 = arith.constant 0 : index
      %296 = vector.load %arg3[%c0_74, %c0_75] : memref<8x128xf32, #tpu.memory_space<vmem>>, vector<8x128xf32>
      %c0_76 = arith.constant 0 : index
      %c0_77 = arith.constant 0 : index
      %297 = vector.load %arg6[%c0_76, %c0_77] : memref<8x128xf32, #tpu.memory_space<vmem>>, vector<8x128xf32>
      tpu.vector_store %arg6[%c0_76, %c0_77], %296 {strides = array<i32>} : memref<8x128xf32, #tpu.memory_space<vmem>>, vector<8x128xf32>,
      %c0_78 = arith.constant 0 : index
      %c0_79 = arith.constant 0 : index
      %298 = vector.load %arg4[%c0_78, %c0_79] : memref<8x128xf32, #tpu.memory_space<vmem>>, vector<8x128xf32>
      %c0_80 = arith.constant 0 : index
      %c0_81 = arith.constant 0 : index
      %299 = vector.load %arg7[%c0_80, %c0_81] : memref<8x128xf32, #tpu.memory_space<vmem>>, vector<8x128xf32>
      tpu.vector_store %arg7[%c0_80, %c0_81], %298 {strides = array<i32>} : memref<8x128xf32, #tpu.memory_space<vmem>>, vector<8x128xf32>,
    } else {
    }
    %c0 = arith.constant 0 : index
    %c0_1 = arith.constant 0 : index
    %3 = vector.load %arg8[%c0, %c0_1] : memref<128x512xbf16, #tpu.memory_space<vmem>>, vector<128x512xbf16>
    %c0_2 = arith.constant 0 : index
    %c0_3 = arith.constant 0 : index
    %4 = vector.load %arg6[%c0_2, %c0_3] : memref<8x128xf32, #tpu.memory_space<vmem>>, vector<8x128xf32>
    %c0_4 = arith.constant 0 : index
    %c0_5 = arith.constant 0 : index
    %5 = vector.load %arg7[%c0_4, %c0_5] : memref<8x128xf32, #tpu.memory_space<vmem>>, vector<8x128xf32>
    %c0_i32_6 = arith.constant 0 : i32
    %6 = arith.truncf %4 : vector<8x128xf32> to vector<8x128xbf16>
    %cst = arith.constant dense<0.000000e+00> : vector<8x512xf32>
    %7 = tpu.matmul %6, %3, %cst {dimension_numbers = #tpu.dot_dimension_numbers<[1], [0], [0], [1], [0, 0, 1, 1], [], []>} : vector<8x128xbf16>, vector<128x512xbf16>, vector<8x512xf32> -> vector<8x512xf32>
    %8 = arith.index_cast %c0_i32_6 : i32 to index
    %c0_7 = arith.constant 0 : index
    %c0_8 = arith.constant 0 : index
    %9 = vector.load %arg1[%8, %c0_7, %c0_8] : memref<8x8x512xbf16, #tpu.memory_space<vmem>>, vector<1x8x512xbf16>
    %10 = vector.shape_cast %9 : vector<1x8x512xbf16> to vector<8x512xbf16>
    %11 = arith.extf %10 : vector<8x512xbf16> to vector<8x512xf32>
    %12 = arith.addf %7, %11 : vector<8x512xf32>
    %13 = vector.extract_strided_slice %12 {offsets = [0, 0], sizes = [8, 128], strides = [1, 1]} : vector<8x512xf32> to vector<8x128xf32>
    %14 = arith.negf %13 : vector<8x128xf32>
    %15 = math.exp %14 : vector<8x128xf32>
    %cst_9 = arith.constant 1.000000e+00 : f32
    %16 = vector.broadcast %cst_9 : f32 to vector<8x128xf32>
    %17 = arith.addf %16, %15 : vector<8x128xf32>
    %18 = arith.divf %16, %17 : vector<8x128xf32>
    %19 = vector.extract_strided_slice %12 {offsets = [0, 128], sizes = [8, 128], strides = [1, 1]} : vector<8x512xf32> to vector<8x128xf32>
    %20 = arith.negf %19 : vector<8x128xf32>
    %21 = math.exp %20 : vector<8x128xf32>
    %cst_10 = arith.constant 1.000000e+00 : f32
    %22 = vector.broadcast %cst_10 : f32 to vector<8x128xf32>
    %23 = arith.addf %22, %21 : vector<8x128xf32>
    %24 = arith.divf %22, %23 : vector<8x128xf32>
    %25 = vector.extract_strided_slice %12 {offsets = [0, 256], sizes = [8, 128], strides = [1, 1]} : vector<8x512xf32> to vector<8x128xf32>
    %26 = math.tanh %25 : vector<8x128xf32>
    %27 = vector.extract_strided_slice %12 {offsets = [0, 384], sizes = [8, 128], strides = [1, 1]} : vector<8x512xf32> to vector<8x128xf32>
    %28 = arith.negf %27 : vector<8x128xf32>
    %29 = math.exp %28 : vector<8x128xf32>
    %cst_11 = arith.constant 1.000000e+00 : f32
    %30 = vector.broadcast %cst_11 : f32 to vector<8x128xf32>
    %31 = arith.addf %30, %29 : vector<8x128xf32>
    %32 = arith.divf %30, %31 : vector<8x128xf32>
    %33 = arith.mulf %5, %24 : vector<8x128xf32>
    %34 = arith.mulf %18, %26 : vector<8x128xf32>
    %35 = arith.addf %33, %34 : vector<8x128xf32>
    %36 = math.tanh %35 : vector<8x128xf32>
    %37 = arith.mulf %32, %36 : vector<8x128xf32>
    %38 = arith.index_cast %c0_i32_6 : i32 to index
    %c0_12 = arith.constant 0 : index
    %c0_13 = arith.constant 0 : index
    %39 = vector.load %arg5[%38, %c0_12, %c0_13] : memref<8x8x128xf32, #tpu.memory_space<vmem>>, vector<1x8x128xf32>
    %40 = vector.shape_cast %39 : vector<1x8x128xf32> to vector<8x128xf32>
    %41 = vector.shape_cast %37 : vector<8x128xf32> to vector<1x8x128xf32>
    tpu.vector_store %arg5[%38, %c0_12, %c0_13], %41 {strides = array<i32>} : memref<8x8x128xf32, #tpu.memory_space<vmem>>, vector<1x8x128xf32>,
    %c1_i32 = arith.constant 1 : i32
    %42 = arith.truncf %37 : vector<8x128xf32> to vector<8x128xbf16>
    %cst_14 = arith.constant dense<0.000000e+00> : vector<8x512xf32>
    %43 = tpu.matmul %42, %3, %cst_14 {dimension_numbers = #tpu.dot_dimension_numbers<[1], [0], [0], [1], [0, 0, 1, 1], [], []>} : vector<8x128xbf16>, vector<128x512xbf16>, vector<8x512xf32> -> vector<8x512xf32>
    %44 = arith.index_cast %c1_i32 : i32 to index
    %c0_15 = arith.constant 0 : index
    %c0_16 = arith.constant 0 : index
    %45 = vector.load %arg1[%44, %c0_15, %c0_16] : memref<8x8x512xbf16, #tpu.memory_space<vmem>>, vector<1x8x512xbf16>
    %46 = vector.shape_cast %45 : vector<1x8x512xbf16> to vector<8x512xbf16>
    %47 = arith.extf %46 : vector<8x512xbf16> to vector<8x512xf32>
    %48 = arith.addf %43, %47 : vector<8x512xf32>
    %49 = vector.extract_strided_slice %48 {offsets = [0, 0], sizes = [8, 128], strides = [1, 1]} : vector<8x512xf32> to vector<8x128xf32>
    %50 = arith.negf %49 : vector<8x128xf32>
    %51 = math.exp %50 : vector<8x128xf32>
    %cst_17 = arith.constant 1.000000e+00 : f32
    %52 = vector.broadcast %cst_17 : f32 to vector<8x128xf32>
    %53 = arith.addf %52, %51 : vector<8x128xf32>
    %54 = arith.divf %52, %53 : vector<8x128xf32>
    %55 = vector.extract_strided_slice %48 {offsets = [0, 128], sizes = [8, 128], strides = [1, 1]} : vector<8x512xf32> to vector<8x128xf32>
    %56 = arith.negf %55 : vector<8x128xf32>
    %57 = math.exp %56 : vector<8x128xf32>
    %cst_18 = arith.constant 1.000000e+00 : f32
    %58 = vector.broadcast %cst_18 : f32 to vector<8x128xf32>
    %59 = arith.addf %58, %57 : vector<8x128xf32>
    %60 = arith.divf %58, %59 : vector<8x128xf32>
    %61 = vector.extract_strided_slice %48 {offsets = [0, 256], sizes = [8, 128], strides = [1, 1]} : vector<8x512xf32> to vector<8x128xf32>
    %62 = math.tanh %61 : vector<8x128xf32>
    %63 = vector.extract_strided_slice %48 {offsets = [0, 384], sizes = [8, 128], strides = [1, 1]} : vector<8x512xf32> to vector<8x128xf32>
    %64 = arith.negf %63 : vector<8x128xf32>
    %65 = math.exp %64 : vector<8x128xf32>
    %cst_19 = arith.constant 1.000000e+00 : f32
    %66 = vector.broadcast %cst_19 : f32 to vector<8x128xf32>
    %67 = arith.addf %66, %65 : vector<8x128xf32>
    %68 = arith.divf %66, %67 : vector<8x128xf32>
    %69 = arith.mulf %35, %60 : vector<8x128xf32>
    %70 = arith.mulf %54, %62 : vector<8x128xf32>
    %71 = arith.addf %69, %70 : vector<8x128xf32>
    %72 = math.tanh %71 : vector<8x128xf32>
    %73 = arith.mulf %68, %72 : vector<8x128xf32>
    %74 = arith.index_cast %c1_i32 : i32 to index
    %c0_20 = arith.constant 0 : index
    %c0_21 = arith.constant 0 : index
    %75 = vector.load %arg5[%74, %c0_20, %c0_21] : memref<8x8x128xf32, #tpu.memory_space<vmem>>, vector<1x8x128xf32>
    %76 = vector.shape_cast %75 : vector<1x8x128xf32> to vector<8x128xf32>
    %77 = vector.shape_cast %73 : vector<8x128xf32> to vector<1x8x128xf32>
    tpu.vector_store %arg5[%74, %c0_20, %c0_21], %77 {strides = array<i32>} : memref<8x8x128xf32, #tpu.memory_space<vmem>>, vector<1x8x128xf32>,
    %c2_i32 = arith.constant 2 : i32
    %78 = arith.truncf %73 : vector<8x128xf32> to vector<8x128xbf16>
    %cst_22 = arith.constant dense<0.000000e+00> : vector<8x512xf32>
    %79 = tpu.matmul %78, %3, %cst_22 {dimension_numbers = #tpu.dot_dimension_numbers<[1], [0], [0], [1], [0, 0, 1, 1], [], []>} : vector<8x128xbf16>, vector<128x512xbf16>, vector<8x512xf32> -> vector<8x512xf32>
    %80 = arith.index_cast %c2_i32 : i32 to index
    %c0_23 = arith.constant 0 : index
    %c0_24 = arith.constant 0 : index
    %81 = vector.load %arg1[%80, %c0_23, %c0_24] : memref<8x8x512xbf16, #tpu.memory_space<vmem>>, vector<1x8x512xbf16>
    %82 = vector.shape_cast %81 : vector<1x8x512xbf16> to vector<8x512xbf16>
    %83 = arith.extf %82 : vector<8x512xbf16> to vector<8x512xf32>
    %84 = arith.addf %79, %83 : vector<8x512xf32>
    %85 = vector.extract_strided_slice %84 {offsets = [0, 0], sizes = [8, 128], strides = [1, 1]} : vector<8x512xf32> to vector<8x128xf32>
    %86 = arith.negf %85 : vector<8x128xf32>
    %87 = math.exp %86 : vector<8x128xf32>
    %cst_25 = arith.constant 1.000000e+00 : f32
    %88 = vector.broadcast %cst_25 : f32 to vector<8x128xf32>
    %89 = arith.addf %88, %87 : vector<8x128xf32>
    %90 = arith.divf %88, %89 : vector<8x128xf32>
    %91 = vector.extract_strided_slice %84 {offsets = [0, 128], sizes = [8, 128], strides = [1, 1]} : vector<8x512xf32> to vector<8x128xf32>
    %92 = arith.negf %91 : vector<8x128xf32>
    %93 = math.exp %92 : vector<8x128xf32>
    %cst_26 = arith.constant 1.000000e+00 : f32
    %94 = vector.broadcast %cst_26 : f32 to vector<8x128xf32>
    %95 = arith.addf %94, %93 : vector<8x128xf32>
    %96 = arith.divf %94, %95 : vector<8x128xf32>
    %97 = vector.extract_strided_slice %84 {offsets = [0, 256], sizes = [8, 128], strides = [1, 1]} : vector<8x512xf32> to vector<8x128xf32>
    %98 = math.tanh %97 : vector<8x128xf32>
    %99 = vector.extract_strided_slice %84 {offsets = [0, 384], sizes = [8, 128], strides = [1, 1]} : vector<8x512xf32> to vector<8x128xf32>
    %100 = arith.negf %99 : vector<8x128xf32>
    %101 = math.exp %100 : vector<8x128xf32>
    %cst_27 = arith.constant 1.000000e+00 : f32
    %102 = vector.broadcast %cst_27 : f32 to vector<8x128xf32>
    %103 = arith.addf %102, %101 : vector<8x128xf32>
    %104 = arith.divf %102, %103 : vector<8x128xf32>
    %105 = arith.mulf %71, %96 : vector<8x128xf32>
    %106 = arith.mulf %90, %98 : vector<8x128xf32>
    %107 = arith.addf %105, %106 : vector<8x128xf32>
    %108 = math.tanh %107 : vector<8x128xf32>
    %109 = arith.mulf %104, %108 : vector<8x128xf32>
    %110 = arith.index_cast %c2_i32 : i32 to index
    %c0_28 = arith.constant 0 : index
    %c0_29 = arith.constant 0 : index
    %111 = vector.load %arg5[%110, %c0_28, %c0_29] : memref<8x8x128xf32, #tpu.memory_space<vmem>>, vector<1x8x128xf32>
    %112 = vector.shape_cast %111 : vector<1x8x128xf32> to vector<8x128xf32>
    %113 = vector.shape_cast %109 : vector<8x128xf32> to vector<1x8x128xf32>
    tpu.vector_store %arg5[%110, %c0_28, %c0_29], %113 {strides = array<i32>} : memref<8x8x128xf32, #tpu.memory_space<vmem>>, vector<1x8x128xf32>,
    %c3_i32 = arith.constant 3 : i32
    %114 = arith.truncf %109 : vector<8x128xf32> to vector<8x128xbf16>
    %cst_30 = arith.constant dense<0.000000e+00> : vector<8x512xf32>
    %115 = tpu.matmul %114, %3, %cst_30 {dimension_numbers = #tpu.dot_dimension_numbers<[1], [0], [0], [1], [0, 0, 1, 1], [], []>} : vector<8x128xbf16>, vector<128x512xbf16>, vector<8x512xf32> -> vector<8x512xf32>
    %116 = arith.index_cast %c3_i32 : i32 to index
    %c0_31 = arith.constant 0 : index
    %c0_32 = arith.constant 0 : index
    %117 = vector.load %arg1[%116, %c0_31, %c0_32] : memref<8x8x512xbf16, #tpu.memory_space<vmem>>, vector<1x8x512xbf16>
    %118 = vector.shape_cast %117 : vector<1x8x512xbf16> to vector<8x512xbf16>
    %119 = arith.extf %118 : vector<8x512xbf16> to vector<8x512xf32>
    %120 = arith.addf %115, %119 : vector<8x512xf32>
    %121 = vector.extract_strided_slice %120 {offsets = [0, 0], sizes = [8, 128], strides = [1, 1]} : vector<8x512xf32> to vector<8x128xf32>
    %122 = arith.negf %121 : vector<8x128xf32>
    %123 = math.exp %122 : vector<8x128xf32>
    %cst_33 = arith.constant 1.000000e+00 : f32
    %124 = vector.broadcast %cst_33 : f32 to vector<8x128xf32>
    %125 = arith.addf %124, %123 : vector<8x128xf32>
    %126 = arith.divf %124, %125 : vector<8x128xf32>
    %127 = vector.extract_strided_slice %120 {offsets = [0, 128], sizes = [8, 128], strides = [1, 1]} : vector<8x512xf32> to vector<8x128xf32>
    %128 = arith.negf %127 : vector<8x128xf32>
    %129 = math.exp %128 : vector<8x128xf32>
    %cst_34 = arith.constant 1.000000e+00 : f32
    %130 = vector.broadcast %cst_34 : f32 to vector<8x128xf32>
    %131 = arith.addf %130, %129 : vector<8x128xf32>
    %132 = arith.divf %130, %131 : vector<8x128xf32>
    %133 = vector.extract_strided_slice %120 {offsets = [0, 256], sizes = [8, 128], strides = [1, 1]} : vector<8x512xf32> to vector<8x128xf32>
    %134 = math.tanh %133 : vector<8x128xf32>
    %135 = vector.extract_strided_slice %120 {offsets = [0, 384], sizes = [8, 128], strides = [1, 1]} : vector<8x512xf32> to vector<8x128xf32>
    %136 = arith.negf %135 : vector<8x128xf32>
    %137 = math.exp %136 : vector<8x128xf32>
    %cst_35 = arith.constant 1.000000e+00 : f32
    %138 = vector.broadcast %cst_35 : f32 to vector<8x128xf32>
    %139 = arith.addf %138, %137 : vector<8x128xf32>
    %140 = arith.divf %138, %139 : vector<8x128xf32>
    %141 = arith.mulf %107, %132 : vector<8x128xf32>
    %142 = arith.mulf %126, %134 : vector<8x128xf32>
    %143 = arith.addf %141, %142 : vector<8x128xf32>
    %144 = math.tanh %143 : vector<8x128xf32>
    %145 = arith.mulf %140, %144 : vector<8x128xf32>
    %146 = arith.index_cast %c3_i32 : i32 to index
    %c0_36 = arith.constant 0 : index
    %c0_37 = arith.constant 0 : index
    %147 = vector.load %arg5[%146, %c0_36, %c0_37] : memref<8x8x128xf32, #tpu.memory_space<vmem>>, vector<1x8x128xf32>
    %148 = vector.shape_cast %147 : vector<1x8x128xf32> to vector<8x128xf32>
    %149 = vector.shape_cast %145 : vector<8x128xf32> to vector<1x8x128xf32>
    tpu.vector_store %arg5[%146, %c0_36, %c0_37], %149 {strides = array<i32>} : memref<8x8x128xf32, #tpu.memory_space<vmem>>, vector<1x8x128xf32>,
    %c4_i32 = arith.constant 4 : i32
    %150 = arith.truncf %145 : vector<8x128xf32> to vector<8x128xbf16>
    %cst_38 = arith.constant dense<0.000000e+00> : vector<8x512xf32>
    %151 = tpu.matmul %150, %3, %cst_38 {dimension_numbers = #tpu.dot_dimension_numbers<[1], [0], [0], [1], [0, 0, 1, 1], [], []>} : vector<8x128xbf16>, vector<128x512xbf16>, vector<8x512xf32> -> vector<8x512xf32>
    %152 = arith.index_cast %c4_i32 : i32 to index
    %c0_39 = arith.constant 0 : index
    %c0_40 = arith.constant 0 : index
    %153 = vector.load %arg1[%152, %c0_39, %c0_40] : memref<8x8x512xbf16, #tpu.memory_space<vmem>>, vector<1x8x512xbf16>
    %154 = vector.shape_cast %153 : vector<1x8x512xbf16> to vector<8x512xbf16>
    %155 = arith.extf %154 : vector<8x512xbf16> to vector<8x512xf32>
    %156 = arith.addf %151, %155 : vector<8x512xf32>
    %157 = vector.extract_strided_slice %156 {offsets = [0, 0], sizes = [8, 128], strides = [1, 1]} : vector<8x512xf32> to vector<8x128xf32>
    %158 = arith.negf %157 : vector<8x128xf32>
    %159 = math.exp %158 : vector<8x128xf32>
    %cst_41 = arith.constant 1.000000e+00 : f32
    %160 = vector.broadcast %cst_41 : f32 to vector<8x128xf32>
    %161 = arith.addf %160, %159 : vector<8x128xf32>
    %162 = arith.divf %160, %161 : vector<8x128xf32>
    %163 = vector.extract_strided_slice %156 {offsets = [0, 128], sizes = [8, 128], strides = [1, 1]} : vector<8x512xf32> to vector<8x128xf32>
    %164 = arith.negf %163 : vector<8x128xf32>
    %165 = math.exp %164 : vector<8x128xf32>
    %cst_42 = arith.constant 1.000000e+00 : f32
    %166 = vector.broadcast %cst_42 : f32 to vector<8x128xf32>
    %167 = arith.addf %166, %165 : vector<8x128xf32>
    %168 = arith.divf %166, %167 : vector<8x128xf32>
    %169 = vector.extract_strided_slice %156 {offsets = [0, 256], sizes = [8, 128], strides = [1, 1]} : vector<8x512xf32> to vector<8x128xf32>
    %170 = math.tanh %169 : vector<8x128xf32>
    %171 = vector.extract_strided_slice %156 {offsets = [0, 384], sizes = [8, 128], strides = [1, 1]} : vector<8x512xf32> to vector<8x128xf32>
    %172 = arith.negf %171 : vector<8x128xf32>
    %173 = math.exp %172 : vector<8x128xf32>
    %cst_43 = arith.constant 1.000000e+00 : f32
    %174 = vector.broadcast %cst_43 : f32 to vector<8x128xf32>
    %175 = arith.addf %174, %173 : vector<8x128xf32>
    %176 = arith.divf %174, %175 : vector<8x128xf32>
    %177 = arith.mulf %143, %168 : vector<8x128xf32>
    %178 = arith.mulf %162, %170 : vector<8x128xf32>
    %179 = arith.addf %177, %178 : vector<8x128xf32>
    %180 = math.tanh %179 : vector<8x128xf32>
    %181 = arith.mulf %176, %180 : vector<8x128xf32>
    %182 = arith.index_cast %c4_i32 : i32 to index
    %c0_44 = arith.constant 0 : index
    %c0_45 = arith.constant 0 : index
    %183 = vector.load %arg5[%182, %c0_44, %c0_45] : memref<8x8x128xf32, #tpu.memory_space<vmem>>, vector<1x8x128xf32>
    %184 = vector.shape_cast %183 : vector<1x8x128xf32> to vector<8x128xf32>
    %185 = vector.shape_cast %181 : vector<8x128xf32> to vector<1x8x128xf32>
    tpu.vector_store %arg5[%182, %c0_44, %c0_45], %185 {strides = array<i32>} : memref<8x8x128xf32, #tpu.memory_space<vmem>>, vector<1x8x128xf32>,
    %c5_i32 = arith.constant 5 : i32
    %186 = arith.truncf %181 : vector<8x128xf32> to vector<8x128xbf16>
    %cst_46 = arith.constant dense<0.000000e+00> : vector<8x512xf32>
    %187 = tpu.matmul %186, %3, %cst_46 {dimension_numbers = #tpu.dot_dimension_numbers<[1], [0], [0], [1], [0, 0, 1, 1], [], []>} : vector<8x128xbf16>, vector<128x512xbf16>, vector<8x512xf32> -> vector<8x512xf32>
    %188 = arith.index_cast %c5_i32 : i32 to index
    %c0_47 = arith.constant 0 : index
    %c0_48 = arith.constant 0 : index
    %189 = vector.load %arg1[%188, %c0_47, %c0_48] : memref<8x8x512xbf16, #tpu.memory_space<vmem>>, vector<1x8x512xbf16>
    %190 = vector.shape_cast %189 : vector<1x8x512xbf16> to vector<8x512xbf16>
    %191 = arith.extf %190 : vector<8x512xbf16> to vector<8x512xf32>
    %192 = arith.addf %187, %191 : vector<8x512xf32>
    %193 = vector.extract_strided_slice %192 {offsets = [0, 0], sizes = [8, 128], strides = [1, 1]} : vector<8x512xf32> to vector<8x128xf32>
    %194 = arith.negf %193 : vector<8x128xf32>
    %195 = math.exp %194 : vector<8x128xf32>
    %cst_49 = arith.constant 1.000000e+00 : f32
    %196 = vector.broadcast %cst_49 : f32 to vector<8x128xf32>
    %197 = arith.addf %196, %195 : vector<8x128xf32>
    %198 = arith.divf %196, %197 : vector<8x128xf32>
    %199 = vector.extract_strided_slice %192 {offsets = [0, 128], sizes = [8, 128], strides = [1, 1]} : vector<8x512xf32> to vector<8x128xf32>
    %200 = arith.negf %199 : vector<8x128xf32>
    %201 = math.exp %200 : vector<8x128xf32>
    %cst_50 = arith.constant 1.000000e+00 : f32
    %202 = vector.broadcast %cst_50 : f32 to vector<8x128xf32>
    %203 = arith.addf %202, %201 : vector<8x128xf32>
    %204 = arith.divf %202, %203 : vector<8x128xf32>
    %205 = vector.extract_strided_slice %192 {offsets = [0, 256], sizes = [8, 128], strides = [1, 1]} : vector<8x512xf32> to vector<8x128xf32>
    %206 = math.tanh %205 : vector<8x128xf32>
    %207 = vector.extract_strided_slice %192 {offsets = [0, 384], sizes = [8, 128], strides = [1, 1]} : vector<8x512xf32> to vector<8x128xf32>
    %208 = arith.negf %207 : vector<8x128xf32>
    %209 = math.exp %208 : vector<8x128xf32>
    %cst_51 = arith.constant 1.000000e+00 : f32
    %210 = vector.broadcast %cst_51 : f32 to vector<8x128xf32>
    %211 = arith.addf %210, %209 : vector<8x128xf32>
    %212 = arith.divf %210, %211 : vector<8x128xf32>
    %213 = arith.mulf %179, %204 : vector<8x128xf32>
    %214 = arith.mulf %198, %206 : vector<8x128xf32>
    %215 = arith.addf %213, %214 : vector<8x128xf32>
    %216 = math.tanh %215 : vector<8x128xf32>
    %217 = arith.mulf %212, %216 : vector<8x128xf32>
    %218 = arith.index_cast %c5_i32 : i32 to index
    %c0_52 = arith.constant 0 : index
    %c0_53 = arith.constant 0 : index
    %219 = vector.load %arg5[%218, %c0_52, %c0_53] : memref<8x8x128xf32, #tpu.memory_space<vmem>>, vector<1x8x128xf32>
    %220 = vector.shape_cast %219 : vector<1x8x128xf32> to vector<8x128xf32>
    %221 = vector.shape_cast %217 : vector<8x128xf32> to vector<1x8x128xf32>
    tpu.vector_store %arg5[%218, %c0_52, %c0_53], %221 {strides = array<i32>} : memref<8x8x128xf32, #tpu.memory_space<vmem>>, vector<1x8x128xf32>,
    %c6_i32 = arith.constant 6 : i32
    %222 = arith.truncf %217 : vector<8x128xf32> to vector<8x128xbf16>
    %cst_54 = arith.constant dense<0.000000e+00> : vector<8x512xf32>
    %223 = tpu.matmul %222, %3, %cst_54 {dimension_numbers = #tpu.dot_dimension_numbers<[1], [0], [0], [1], [0, 0, 1, 1], [], []>} : vector<8x128xbf16>, vector<128x512xbf16>, vector<8x512xf32> -> vector<8x512xf32>
    %224 = arith.index_cast %c6_i32 : i32 to index
    %c0_55 = arith.constant 0 : index
    %c0_56 = arith.constant 0 : index
    %225 = vector.load %arg1[%224, %c0_55, %c0_56] : memref<8x8x512xbf16, #tpu.memory_space<vmem>>, vector<1x8x512xbf16>
    %226 = vector.shape_cast %225 : vector<1x8x512xbf16> to vector<8x512xbf16>
    %227 = arith.extf %226 : vector<8x512xbf16> to vector<8x512xf32>
    %228 = arith.addf %223, %227 : vector<8x512xf32>
    %229 = vector.extract_strided_slice %228 {offsets = [0, 0], sizes = [8, 128], strides = [1, 1]} : vector<8x512xf32> to vector<8x128xf32>
    %230 = arith.negf %229 : vector<8x128xf32>
    %231 = math.exp %230 : vector<8x128xf32>
    %cst_57 = arith.constant 1.000000e+00 : f32
    %232 = vector.broadcast %cst_57 : f32 to vector<8x128xf32>
    %233 = arith.addf %232, %231 : vector<8x128xf32>
    %234 = arith.divf %232, %233 : vector<8x128xf32>
    %235 = vector.extract_strided_slice %228 {offsets = [0, 128], sizes = [8, 128], strides = [1, 1]} : vector<8x512xf32> to vector<8x128xf32>
    %236 = arith.negf %235 : vector<8x128xf32>
    %237 = math.exp %236 : vector<8x128xf32>
    %cst_58 = arith.constant 1.000000e+00 : f32
    %238 = vector.broadcast %cst_58 : f32 to vector<8x128xf32>
    %239 = arith.addf %238, %237 : vector<8x128xf32>
    %240 = arith.divf %238, %239 : vector<8x128xf32>
    %241 = vector.extract_strided_slice %228 {offsets = [0, 256], sizes = [8, 128], strides = [1, 1]} : vector<8x512xf32> to vector<8x128xf32>
    %242 = math.tanh %241 : vector<8x128xf32>
    %243 = vector.extract_strided_slice %228 {offsets = [0, 384], sizes = [8, 128], strides = [1, 1]} : vector<8x512xf32> to vector<8x128xf32>
    %244 = arith.negf %243 : vector<8x128xf32>
    %245 = math.exp %244 : vector<8x128xf32>
    %cst_59 = arith.constant 1.000000e+00 : f32
    %246 = vector.broadcast %cst_59 : f32 to vector<8x128xf32>
    %247 = arith.addf %246, %245 : vector<8x128xf32>
    %248 = arith.divf %246, %247 : vector<8x128xf32>
    %249 = arith.mulf %215, %240 : vector<8x128xf32>
    %250 = arith.mulf %234, %242 : vector<8x128xf32>
    %251 = arith.addf %249, %250 : vector<8x128xf32>
    %252 = math.tanh %251 : vector<8x128xf32>
    %253 = arith.mulf %248, %252 : vector<8x128xf32>
    %254 = arith.index_cast %c6_i32 : i32 to index
    %c0_60 = arith.constant 0 : index
    %c0_61 = arith.constant 0 : index
    %255 = vector.load %arg5[%254, %c0_60, %c0_61] : memref<8x8x128xf32, #tpu.memory_space<vmem>>, vector<1x8x128xf32>
    %256 = vector.shape_cast %255 : vector<1x8x128xf32> to vector<8x128xf32>
    %257 = vector.shape_cast %253 : vector<8x128xf32> to vector<1x8x128xf32>
    tpu.vector_store %arg5[%254, %c0_60, %c0_61], %257 {strides = array<i32>} : memref<8x8x128xf32, #tpu.memory_space<vmem>>, vector<1x8x128xf32>,
    %c7_i32 = arith.constant 7 : i32
    %258 = arith.truncf %253 : vector<8x128xf32> to vector<8x128xbf16>
    %cst_62 = arith.constant dense<0.000000e+00> : vector<8x512xf32>
    %259 = tpu.matmul %258, %3, %cst_62 {dimension_numbers = #tpu.dot_dimension_numbers<[1], [0], [0], [1], [0, 0, 1, 1], [], []>} : vector<8x128xbf16>, vector<128x512xbf16>, vector<8x512xf32> -> vector<8x512xf32>
    %260 = arith.index_cast %c7_i32 : i32 to index
    %c0_63 = arith.constant 0 : index
    %c0_64 = arith.constant 0 : index
    %261 = vector.load %arg1[%260, %c0_63, %c0_64] : memref<8x8x512xbf16, #tpu.memory_space<vmem>>, vector<1x8x512xbf16>
    %262 = vector.shape_cast %261 : vector<1x8x512xbf16> to vector<8x512xbf16>
    %263 = arith.extf %262 : vector<8x512xbf16> to vector<8x512xf32>
    %264 = arith.addf %259, %263 : vector<8x512xf32>
    %265 = vector.extract_strided_slice %264 {offsets = [0, 0], sizes = [8, 128], strides = [1, 1]} : vector<8x512xf32> to vector<8x128xf32>
    %266 = arith.negf %265 : vector<8x128xf32>
    %267 = math.exp %266 : vector<8x128xf32>
    %cst_65 = arith.constant 1.000000e+00 : f32
    %268 = vector.broadcast %cst_65 : f32 to vector<8x128xf32>
    %269 = arith.addf %268, %267 : vector<8x128xf32>
    %270 = arith.divf %268, %269 : vector<8x128xf32>
    %271 = vector.extract_strided_slice %264 {offsets = [0, 128], sizes = [8, 128], strides = [1, 1]} : vector<8x512xf32> to vector<8x128xf32>
    %272 = arith.negf %271 : vector<8x128xf32>
    %273 = math.exp %272 : vector<8x128xf32>
    %cst_66 = arith.constant 1.000000e+00 : f32
    %274 = vector.broadcast %cst_66 : f32 to vector<8x128xf32>
    %275 = arith.addf %274, %273 : vector<8x128xf32>
    %276 = arith.divf %274, %275 : vector<8x128xf32>
    %277 = vector.extract_strided_slice %264 {offsets = [0, 256], sizes = [8, 128], strides = [1, 1]} : vector<8x512xf32> to vector<8x128xf32>
    %278 = math.tanh %277 : vector<8x128xf32>
    %279 = vector.extract_strided_slice %264 {offsets = [0, 384], sizes = [8, 128], strides = [1, 1]} : vector<8x512xf32> to vector<8x128xf32>
    %280 = arith.negf %279 : vector<8x128xf32>
    %281 = math.exp %280 : vector<8x128xf32>
    %cst_67 = arith.constant 1.000000e+00 : f32
    %282 = vector.broadcast %cst_67 : f32 to vector<8x128xf32>
    %283 = arith.addf %282, %281 : vector<8x128xf32>
    %284 = arith.divf %282, %283 : vector<8x128xf32>
    %285 = arith.mulf %251, %276 : vector<8x128xf32>
    %286 = arith.mulf %270, %278 : vector<8x128xf32>
    %287 = arith.addf %285, %286 : vector<8x128xf32>
    %288 = math.tanh %287 : vector<8x128xf32>
    %289 = arith.mulf %284, %288 : vector<8x128xf32>
    %290 = arith.index_cast %c7_i32 : i32 to index
    %c0_68 = arith.constant 0 : index
    %c0_69 = arith.constant 0 : index
    %291 = vector.load %arg5[%290, %c0_68, %c0_69] : memref<8x8x128xf32, #tpu.memory_space<vmem>>, vector<1x8x128xf32>
    %292 = vector.shape_cast %291 : vector<1x8x128xf32> to vector<8x128xf32>
    %293 = vector.shape_cast %289 : vector<8x128xf32> to vector<1x8x128xf32>
    tpu.vector_store %arg5[%290, %c0_68, %c0_69], %293 {strides = array<i32>} : memref<8x8x128xf32, #tpu.memory_space<vmem>>, vector<1x8x128xf32>,
    %c8_i32 = arith.constant 8 : i32
    %c0_70 = arith.constant 0 : index
    %c0_71 = arith.constant 0 : index
    %294 = vector.load %arg6[%c0_70, %c0_71] : memref<8x128xf32, #tpu.memory_space<vmem>>, vector<8x128xf32>
    tpu.vector_store %arg6[%c0_70, %c0_71], %289 {strides = array<i32>} : memref<8x128xf32, #tpu.memory_space<vmem>>, vector<8x128xf32>,
    %c0_72 = arith.constant 0 : index
    %c0_73 = arith.constant 0 : index
    %295 = vector.load %arg7[%c0_72, %c0_73] : memref<8x128xf32, #tpu.memory_space<vmem>>, vector<8x128xf32>
    tpu.vector_store %arg7[%c0_72, %c0_73], %287 {strides = array<i32>} : memref<8x128xf32, #tpu.memory_space<vmem>>, vector<8x128xf32>,
    return
  }
  func.func @transform_0(%arg0: i32) -> (i32, i32, i32) {
    %c0_i32 = arith.constant 0 : i32
    %c0_i32_0 = arith.constant 0 : i32
    %c0_i32_1 = arith.constant 0 : i32
    return %arg0, %c0_i32, %c0_i32_0 : i32, i32, i32
  }
  func.func @transform_2(%arg0: i32) -> (i32, i32) {
    %c0_i32 = arith.constant 0 : i32
    %c0_i32_0 = arith.constant 0 : i32
    %c0_i32_1 = arith.constant 0 : i32
    return %c0_i32, %c0_i32_0 : i32, i32
  }
  func.func @transform_3(%arg0: i32) -> (i32, i32) {
    %c0_i32 = arith.constant 0 : i32
    %c0_i32_0 = arith.constant 0 : i32
    %c0_i32_1 = arith.constant 0 : i32
    return %c0_i32, %c0_i32_0 : i32, i32
  }
  func.func @transform_4(%arg0: i32) -> (i32, i32, i32) {
    %c0_i32 = arith.constant 0 : i32
    %c0_i32_0 = arith.constant 0 : i32
    %c0_i32_1 = arith.constant 0 : i32
    return %arg0, %c0_i32, %c0_i32_0 : i32, i32, i32
  }
  func.func @transform_5(%arg0: i32) -> (i32, i32) {
    %c0_i32 = arith.constant 0 : i32
    %c0_i32_0 = arith.constant 0 : i32
    %c0_i32_1 = arith.constant 0 : i32
    return %c0_i32, %c0_i32_0 : i32, i32
  }
  func.func @transform_6(%arg0: i32) -> (i32, i32) {
    %c0_i32 = arith.constant 0 : i32
    %c0_i32_0 = arith.constant 0 : i32
    %c0_i32_1 = arith.constant 0 : i32
    return %c0_i32, %c0_i32_0 : i32, i32
  }
}

</mosaic_0001>

<bundles_post_ra>
// kernel: tpu_custom_call.1
= control target key start
LH: loop header
LB: loop body
LE: loop exit
PB: predicated region body
PF: predicated region fallthrough
CT: control target
= control target key end

     0   :  { %12 = vsyncpa [#allocation4], 0  ;;  %s2073_s0 = inlined_call_operand.hbm [shape: bf16[8,8,512], index: 0, kind: input, shape index: {}]   ;;  %s2074_s1 = inlined_call_operand.hbm [shape: bf16[128,512], index: 1, kind: input, shape index: {}]   ;;  %s2075_s2 = inlined_call_operand.hbm [shape: f32[8,128], index: 2, kind: input, shape index: {}]   ;;  %s2076_s3 = inlined_call_operand.hbm [shape: f32[8,128], index: 3, kind: input, shape index: {}]   ;;  %s2077_s4 = inlined_call_operand.hbm [shape: f32[8,8,128], index: 4, kind: output, shape index: {0}]   ;;  %s2078_s5 = inlined_call_operand.hbm [shape: f32[8,128], index: 5, kind: output, shape index: {1}]   ;;  %s2079_s6 = inlined_call_operand.hbm [shape: f32[8,128], index: 6, kind: output, shape index: {2}]  }
   0x1   :  { %13 = vsyncpa [#allocation7], 0 }
   0x2   :  { %14 = vsyncpa [#allocation5], 0 }
   0x3   :  { %15 = vsyncpa [#allocation11], 0  ;;  %s1674_s21 = smov [#allocation6]   ;;  %s1675_s23 = smov [#allocation3]  }
   0x4   :  { %s34_s22 = sshll.u32 %s1674_s21, 4  ;;  %s21_s24 = sshll.u32 %s1675_s23, 4  ;;  %s35_s22 = int_to_ptr.vmem [resolvable:$true] %s34_s22  ;;  %s22_s24 = int_to_ptr.vmem [resolvable:$true] %s21_s24 }
   0x5   :  { %s1532_s25 = scalar_lea.vmem %s35_s22, 128  ;;  %p1537_p1 = scmp.lt.s32.totalorder %s35_s22, %s35_s22 }
   0x6   :  { %p1533_p0 = scmp.ne.s32.totalorder %s35_s22, %s1532_s25  ;;  %p1538_p2 = scmp.lt.s32.totalorder %s1532_s25, %s1532_s25 }
   0x8   :  { %p1539_p3 = por %p1538_p2, %p1537_p1 }
   0xa   :  { %p1540_p4 = pnand %p1539_p3, %p1533_p0 }
   0xc   :  { %1543 = shalt.err (!%p1540_p4)
}
   0xd   :  { %37 = dma.hbm_to_vmem [thread:$0]  %s2075_s2, 128, %s35_s22, [#allocation7]  }
   0xe   :  { %s1552_s28 = scalar_lea.vmem %s22_s24, 2048  ;;  %p1557_p6 = scmp.lt.s32.totalorder %s22_s24, %s22_s24 }
   0xf   :  { %p1553_p5 = scmp.ne.s32.totalorder %s22_s24, %s1552_s28  ;;  %p1558_p7 = scmp.lt.s32.totalorder %s1552_s28, %s1552_s28 }
  0x11   :  { %p1559_p8 = por %p1558_p7, %p1557_p6 }
  0x13   :  { %p1560_p9 = pnand %p1559_p8, %p1553_p5 }
  0x15   :  { %1563 = shalt.err (!%p1560_p9)
}
  0x16   :  { %s1676_s29 = smov 256   ;;  %s1677_s30 = smov 16  }
  0x17   :  { %27 = dma.hbm_to_vmem [thread:$0]  %s2073_s0, 2048, %s22_s24, [#allocation4], %s1676_s29, %s1676_s29, %s1677_s30  }
  0x18   :  { %s1678_s9 = smov [#allocation8]  }
  0x19   :  { %s44_s10 = sshll.u32 %s1678_s9, 4  ;;  %s45_s10 = int_to_ptr.vmem [resolvable:$true] %s44_s10 }
  0x1a   :  { %s1572_s11 = scalar_lea.vmem %s45_s10, 128  ;;  %p1577_p11 = scmp.lt.s32.totalorder %s45_s10, %s45_s10 }
  0x1b   :  { %p1573_p10 = scmp.ne.s32.totalorder %s45_s10, %s1572_s11  ;;  %p1578_p12 = scmp.lt.s32.totalorder %s1572_s11, %s1572_s11 }
  0x1d   :  { %p1579_p13 = por %p1578_p12, %p1577_p11 }
  0x1f   :  { %p1580_p0 = pnand %p1579_p13, %p1573_p10 }
  0x21   :  { %1583 = shalt.err (!%p1580_p0)
}
  0x22   :  { %47 = dma.hbm_to_vmem [thread:$0]  %s2076_s3, 128, %s45_s10, [#allocation7]  }
  0x23   :  { %1664 = dma.done.wait [#allocation4], 2048  }
  0x24   :  { %1665 = vsyncadd [#allocation4], 4294965248 }
  0x25   :  { %1666 = dma.done.wait [#allocation7], 256  }
  0x26   :  { %1667 = vsyncadd [#allocation7], 4294967040 }
  0x27   :  { %s1679_s13 = smov [#allocation2]  }
  0x28   :  { %s69_s0 = sshll.u32 %s1679_s13, 4  ;;  %s70_s0 = int_to_ptr.vmem [resolvable:$true] %s69_s0 }
  0x29   :  { %s1592_s14 = scalar_lea.vmem %s70_s0, 4096  ;;  %p1597_p2 = scmp.lt.s32.totalorder %s70_s0, %s70_s0 }
  0x2a   :  { %p1593_p1 = scmp.ne.s32.totalorder %s70_s0, %s1592_s14  ;;  %p1598_p3 = scmp.lt.s32.totalorder %s1592_s14, %s1592_s14 }
  0x2c   :  { %p1599_p4 = por %p1598_p3, %p1597_p2 }
  0x2e   :  { %p1600_p5 = pnand %p1599_p4, %p1593_p1 }
  0x30   :  { %1603 = shalt.err (!%p1600_p5)  }
  0x31   :  { %72 = dma.hbm_to_vmem [thread:$0]  %s2074_s1, 4096, %s70_s0, [#allocation13] }
  0x32   :  { %1668 = dma.done.wait [#allocation13], 4096 }
  0x33   :  { %1669 = vsyncadd [#allocation13], 4294963200  ;;  %v1733_v0 = vld [vmem:[#allocation2 + $0xe4] ss:$16 sps:$4 sm:$0xff]   ;;  %v1735_v1 = vld [vmem:[#allocation2 + $0xe0] ss:$16 sps:$4 sm:$0xff]  }
  0x34   :  { %v1680_v2 = vmov 0   ;;  %282 = vmatprep.subr.bf16.mxu0 %v1733_v0  ;;  %v1740_v3 = vld [vmem:[#allocation2 + $0xc4] ss:$16 sps:$4 sm:$0xff]   ;;  %v1743_v4 = vld [vmem:[#allocation2 + $0xc0] ss:$16 sps:$4 sm:$0xff]   ;;  %v117_v45 = vld [vmem:[#allocation3 + $0x8] sm:$0xff] }
  0x35   :  { %314 = vmatprep.mubr.bf16.mxu0 %v1680_v2  ;;  %355 = vmatprep.mubr.bf16.mxu1 %v1680_v2  ;;  %v1746_v5 = vld [vmem:[#allocation2 + $0xa4] ss:$16 sps:$4 sm:$0xff]   ;;  %v1748_v6 = vld [vmem:[#allocation2 + $0xec] ss:$16 sps:$4 sm:$0xff]   ;;  %v1750_v7 = vld [vmem:[#allocation2 + $0xe8] ss:$16 sps:$4 sm:$0xff]   ;;  %v121_v49 = vunpack.c.h.bf16 %v117_v45  ;;  %v120_v51 = vunpack.c.l.bf16 %v117_v45 }
  0x36   :  { %283 = vmatpush1.bf16.msra.mxu0 %v1735_v1  ;;  %v1753_v8 = vld [vmem:[#allocation2 + $0xa0] ss:$16 sps:$4 sm:$0xff]   ;;  %323 = vmatprep.subr.bf16.mxu1 %v1748_v6  ;;  %v1757_v9 = vld [vmem:[#allocation2 + $0x84] ss:$16 sps:$4 sm:$0xff]   ;;  %v1760_v10 = vld [vmem:[#allocation2 + $0xcc] ss:$16 sps:$4 sm:$0xff]  }
  0x37   :  { %284 = vmatprep.subr.bf16.mxu0 %v1740_v3  ;;  %324 = vmatpush1.bf16.msra.mxu1 %v1750_v7  ;;  %v1762_v11 = vld [vmem:[#allocation2 + $0xc8] ss:$16 sps:$4 sm:$0xff]   ;;  %v1766_v12 = vld [vmem:[#allocation2 + $0x80] ss:$16 sps:$4 sm:$0xff]   ;;  %v1768_v13 = vld [vmem:[#allocation2 + $0x64] ss:$16 sps:$4 sm:$0xff]  }
  0x38   :  { %325 = vmatprep.subr.bf16.mxu1 %v1760_v10  ;;  %v1770_v14 = vld [vmem:[#allocation2 + $0xac] ss:$16 sps:$4 sm:$0xff]   ;;  %v1774_v15 = vld [vmem:[#allocation2 + $0xa8] ss:$16 sps:$4 sm:$0xff]   ;;  %v1780_v17 = vld [vmem:[#allocation2 + $0x60] ss:$16 sps:$4 sm:$0xff]  }
  0x39   :  { %v1777_v16 = vld [vmem:[#allocation2 + $0x8c] ss:$16 sps:$4 sm:$0xff]   ;;  %v1783_v18 = vld [vmem:[#allocation2 + $0x44] ss:$16 sps:$4 sm:$0xff]   ;;  %v1786_v19 = vld [vmem:[#allocation2 + $0x88] ss:$16 sps:$4 sm:$0xff]  }
  0x3a   :  { %285 = vmatpush1.bf16.msra.mxu0 %v1743_v4  ;;  %v1789_v20 = vld [vmem:[#allocation2 + $0x6c] ss:$16 sps:$4 sm:$0xff]   ;;  %v1791_v21 = vld [vmem:[#allocation2 + $0x40] ss:$16 sps:$4 sm:$0xff]   ;;  %v1794_v22 = vld [vmem:[#allocation2 + $0x24] ss:$16 sps:$4 sm:$0xff]  }
  0x3b   :  { %286 = vmatprep.subr.bf16.mxu0 %v1746_v5  ;;  %326 = vmatpush1.bf16.msra.mxu1 %v1762_v11  ;;  %v1798_v23 = vld [vmem:[#allocation2 + $0x68] ss:$16 sps:$4 sm:$0xff]   ;;  %v1801_v24 = vld [vmem:[#allocation2 + $0x4c] ss:$16 sps:$4 sm:$0xff]   ;;  %v1804_v25 = vld [vmem:[#allocation2 + $0x20] ss:$16 sps:$4 sm:$0xff]  }
  0x3c   :  { %327 = vmatprep.subr.bf16.mxu1 %v1770_v14  ;;  %v1807_v26 = vld [vmem:[#allocation2 + $0x4] ss:$16 sps:$4 sm:$0xff]   ;;  %v1810_v27 = vld [vmem:[#allocation2 + $0x48] ss:$16 sps:$4 sm:$0xff]   ;;  %v1813_v28 = vld [vmem:[#allocation2 + $0x2c] ss:$16 sps:$4 sm:$0xff]  }
  0x3d   :  { %v1816_v29 = vld [vmem:[#allocation2] ss:$16 sps:$4 sm:$0xff]   ;;  %v1820_v31 = vld [vmem:[#allocation2 + $0x28] ss:$16 sps:$4 sm:$0xff]   ;;  %v1823_v32 = vld [vmem:[#allocation2 + $0xc] ss:$16 sps:$4 sm:$0xff]  }
  0x3e   :  { %287 = vmatpush1.bf16.msra.mxu0 %v1753_v8  ;;  %v77_v30 = vld [vmem:[#allocation6] sm:$0xff]  ;;  %v1827_v34 = vld [vmem:[#allocation2 + $0x8] ss:$16 sps:$4 sm:$0xff]   ;;  %s1681_s1 = smov [#allocation10]   ;;  %s1682_s17 = smov [#allocation9]  }
  0x3f   :  { %288 = vmatprep.subr.bf16.mxu0 %v1757_v9  ;;  %328 = vmatpush1.bf16.msra.mxu1 %v1774_v15  ;;  %v115_v33 = vpack.c.bf16 %v77_v30, %v77_v30  ;;  %v116_v35 = vld [vmem:[#allocation3] sm:$0xff]  ;;  %v79_v63 = vld [vmem:[#allocation8] sm:$0xff]  ;;  %s1221_s3 = sshll.u32 %s1681_s1, 4  ;;  %s1208_s18 = sshll.u32 %s1682_s17, 4  ;;  %s1222_s3 = int_to_ptr.vmem [resolvable:$true] %s1221_s3  ;;  %s1209_s18 = int_to_ptr.vmem [resolvable:$true] %s1208_s18 }
  0x40   :  { %329 = vmatprep.subr.bf16.mxu1 %v1777_v16  ;;  %v118_v36 = vunpack.c.l.bf16 %v116_v35  ;;  %v119_v37 = vunpack.c.h.bf16 %v116_v35  ;;  %s1683_s19 = smov [#allocation12]   ;;  %s1604_s21 = scalar_lea.vmem %s1222_s3, 128 }
  0x41   :  { %s1231_s20 = sshll.u32 %s1683_s19, 4  ;;  %p1605_p6 = scmp.ne.s32.totalorder %s1222_s3, %s1604_s21  ;;  %s1232_s20 = int_to_ptr.vmem [resolvable:$true] %s1231_s20 }
  0x42   :  { %289 = vmatpush1.bf16.msra.mxu0 %v1766_v12  ;;  %p1609_p7 = scmp.lt.s32.totalorder %s1222_s3, %s1222_s3  ;;  %p1610_p8 = scmp.lt.s32.totalorder %s1604_s21, %s1604_s21 }
  0x43   :  { %290 = vmatprep.subr.bf16.mxu0 %v1768_v13  ;;  %330 = vmatpush1.bf16.msra.mxu1 %v1786_v19 }
  0x44   :  { %331 = vmatprep.subr.bf16.mxu1 %v1789_v20  ;;  %p1611_p9 = por %p1610_p8, %p1609_p7 }
  0x46   :  { %291 = vmatpush1.bf16.msra.mxu0 %v1780_v17  ;;  %p1612_p10 = pnand %p1611_p9, %p1605_p6 }
  0x47   :  { %292 = vmatprep.subr.bf16.mxu0 %v1783_v18  ;;  %332 = vmatpush1.bf16.msra.mxu1 %v1798_v23 }
  0x48   :  { %333 = vmatprep.subr.bf16.mxu1 %v1801_v24 }
  0x4a   :  { %293 = vmatpush1.bf16.msra.mxu0 %v1791_v21 }
  0x4b   :  { %294 = vmatprep.subr.bf16.mxu0 %v1794_v22  ;;  %334 = vmatpush1.bf16.msra.mxu1 %v1810_v27 }
  0x4c   :  { %335 = vmatprep.subr.bf16.mxu1 %v1813_v28 }
  0x4e   :  { %295 = vmatpush1.bf16.msra.mxu0 %v1804_v25 }
  0x4f   :  { %296 = vmatprep.subr.bf16.mxu0 %v1807_v26  ;;  %336 = vmatpush1.bf16.msra.mxu1 %v1820_v31 }
  0x50   :  { %337 = vmatprep.subr.bf16.mxu1 %v1823_v32 }
  0x52   :  { %297 = vmatpush1.bf16.msra.mxu0 %v1816_v29 }
  0x53   :  { %397 = vmatprep.subr.bf16.mxu0 %v1733_v0  ;;  %338 = vmatpush1.bf16.msra.mxu1 %v1827_v34 }
  0x54   :  { %438 = vmatprep.subr.bf16.mxu1 %v1748_v6 }
  0x55   :  { %315 = vmatmul.mubr.bf16.vlgmr.msra.gmra.mxu0 %v115_v33 }
  0x56   :  { %398 = vmatpush1.bf16.msra.mxu0 %v1735_v1  ;;  %429 = vmatprep.mubr.bf16.mxu0 %v1680_v2 }
  0x57   :  { %399 = vmatprep.subr.bf16.mxu0 %v1740_v3  ;;  %356 = vmatmul.mubr.bf16.vlgmr.msra.gmra.mxu1 %v115_v33 }
  0x58   :  { %439 = vmatpush1.bf16.msra.mxu1 %v1750_v7  ;;  %470 = vmatprep.mubr.bf16.mxu1 %v1680_v2 }
  0x59   :  { %440 = vmatprep.subr.bf16.mxu1 %v1760_v10 }
  0x5a   :  { %400 = vmatpush1.bf16.msra.mxu0 %v1743_v4 }
  0x5b   :  { %401 = vmatprep.subr.bf16.mxu0 %v1746_v5 }
  0x5c   :  { %441 = vmatpush1.bf16.msra.mxu1 %v1762_v11 }
  0x5d   :  { %442 = vmatprep.subr.bf16.mxu1 %v1770_v14 }
  0x5e   :  { %402 = vmatpush1.bf16.msra.mxu0 %v1753_v8 }
  0x5f   :  { %403 = vmatprep.subr.bf16.mxu0 %v1757_v9 }
  0x60   :  { %443 = vmatpush1.bf16.msra.mxu1 %v1774_v15 }
  0x61   :  { %444 = vmatprep.subr.bf16.mxu1 %v1777_v16 }
  0x62   :  { %404 = vmatpush1.bf16.msra.mxu0 %v1766_v12 }
  0x63   :  { %405 = vmatprep.subr.bf16.mxu0 %v1768_v13 }
  0x64   :  { %445 = vmatpush1.bf16.msra.mxu1 %v1786_v19 }
  0x65   :  { %446 = vmatprep.subr.bf16.mxu1 %v1789_v20 }
  0x66   :  { %406 = vmatpush1.bf16.msra.mxu0 %v1780_v17 }
  0x67   :  { %407 = vmatprep.subr.bf16.mxu0 %v1783_v18 }
  0x68   :  { %447 = vmatpush1.bf16.msra.mxu1 %v1798_v23 }
  0x69   :  { %448 = vmatprep.subr.bf16.mxu1 %v1801_v24 }
  0x6a   :  { %408 = vmatpush1.bf16.msra.mxu0 %v1791_v21 }
  0x6b   :  { %409 = vmatprep.subr.bf16.mxu0 %v1794_v22 }
  0x6c   :  { %449 = vmatpush1.bf16.msra.mxu1 %v1810_v27 }
  0x6d   :  { %450 = vmatprep.subr.bf16.mxu1 %v1813_v28 }
  0x6e   :  { %410 = vmatpush1.bf16.msra.mxu0 %v1804_v25 }
  0x6f   :  { %411 = vmatprep.subr.bf16.mxu0 %v1807_v26 }
  0x70   :  { %451 = vmatpush1.bf16.msra.mxu1 %v1820_v31 }
  0x71   :  { %452 = vmatprep.subr.bf16.mxu1 %v1823_v32 }
  0x72   :  { %412 = vmatpush1.bf16.msra.mxu0 %v1816_v29 }
  0x73   :  { %513 = vmatprep.subr.bf16.mxu0 %v1733_v0 }
  0x74   :  { %453 = vmatpush1.bf16.msra.mxu1 %v1827_v34 }
  0x75   :  { %554 = vmatprep.subr.bf16.mxu1 %v1748_v6 }
 0x115   :  { %v316_v38 = vpop.f32.mrf.mxu0 }
 0x116   :  { %v317_v39 = vadd.f32 %v316_v38, %v118_v36 }
 0x117   :  { %v318_v40 = vpop.f32.mrf.mxu0  ;;  %v357_v46 = vpop.f32.mrf.mxu1 }
 0x118   :  { %v1280_v41 = vmul.f32 -1.442695, %v317_v39  ;;  %v319_v42 = vadd.f32 %v318_v40, %v119_v37  ;;  %v358_v54 = vadd.f32 %v357_v46, %v120_v51 }
 0x119   :  { %v320_v43 = vpop.f32.mrf.mxu0  ;;  %v359_v48 = vpop.f32.mrf.mxu1 }
 0x11a   :  { %1364 = vpow2.f32 %v1280_v41  ;;  %v1281_v44 = vmul.f32 -1.442695, %v319_v42  ;;  %v360_v53 = vadd.f32 %v359_v48, %v121_v49  ;;  %v391_v42 = vld [vmem:[#allocation3 + $0x10] sm:$0xff] }
 0x11b   :  { %v321_v47 = vpop.f32.mrf.mxu0  ;;  %v361_v50 = vpop.f32.mrf.mxu1  ;;  %v393_v43 = vunpack.c.l.bf16 %v391_v42 }
 0x11c   :  { %1366 = vpow2.f32 %v1281_v44  ;;  %v1282_v55 = vmul.f32 -1.442695, %v360_v53  ;;  %v394_v44 = vunpack.c.h.bf16 %v391_v42 }
 0x11d   :  { %v362_v52 = vpop.f32.mrf.mxu1  ;;  %1368 = vtanh.f32 %v358_v54 }
 0x11e   :  { %1370 = vpow2.f32 %v1282_v55 }
 0x127   :  { %v1365_v56 = vpop.eup %1364 }
 0x128   :  { %v367_v57 = vadd.f32 1.0, %v1365_v56 }
 0x129   :  { %v1367_v58 = vpop.eup %1366 }
 0x12a   :  { %1372 = vrcp.f32 %v367_v57  ;;  %v373_v59 = vadd.f32 1.0, %v1367_v58  ;;  %v1369_v60 = vpop.eup %1368  ;;  %v392_v57 = vld [vmem:[#allocation3 + $0x18] sm:$0xff] }
 0x12b   :  { %v1371_v61 = vpop.eup %1370  ;;  %v396_v58 = vunpack.c.h.bf16 %v392_v57 }
 0x12c   :  { %1374 = vrcp.f32 %v373_v59  ;;  %v380_v33 = vadd.f32 1.0, %v1371_v61 }
 0x12e   :  { %1376 = vrcp.f32 %v380_v33 }
 0x137   :  { %v1373_v62 = vpop.eup %1372 }
 0x138   :  { %v384_v36 = vmul.f32 %v1373_v62, %v1369_v60  ;;  %v395_v60 = vunpack.c.l.bf16 %v392_v57 }
 0x139   :  { %v1375_v30 = vpop.eup %1374 }
 0x13a   :  { %v383_v35 = vmul.f32 %v1375_v30, %v79_v63 }
 0x13b   :  { %v1377_v38 = vpop.eup %1376 }
 0x13c   :  { %v1867_v37 = vadd.f32 %v384_v36, %v383_v35 }
 0x13e   :  { %1378 = vtanh.f32 %v1867_v37 }
 0x14b   :  { %v1379_v39 = vpop.eup %1378 }
 0x14c   :  { %v387_v40 = vmul.f32 %v1379_v39, %v1377_v38 }
 0x14e   :  { %388 = vst [vmem:[#allocation9] sm:$0xff] %v387_v40  ;;  %v389_v41 = vpack.c.bf16 %v387_v40, %v387_v40 }
 0x150   :  { %430 = vmatmul.mubr.bf16.vlgmr.msra.gmra.mxu0 %v389_v41  ;;  %471 = vmatmul.mubr.bf16.vlgmr.msra.gmra.mxu1 %v389_v41 }
 0x151   :  { %514 = vmatpush1.bf16.msra.mxu0 %v1735_v1  ;;  %555 = vmatpush1.bf16.msra.mxu1 %v1750_v7 }
 0x152   :  { %515 = vmatprep.subr.bf16.mxu0 %v1740_v3  ;;  %556 = vmatprep.subr.bf16.mxu1 %v1760_v10 }
 0x153   :  { %545 = vmatprep.mubr.bf16.mxu0 %v1680_v2  ;;  %586 = vmatprep.mubr.bf16.mxu1 %v1680_v2 }
 0x155   :  { %516 = vmatpush1.bf16.msra.mxu0 %v1743_v4  ;;  %557 = vmatpush1.bf16.msra.mxu1 %v1762_v11 }
 0x156   :  { %517 = vmatprep.subr.bf16.mxu0 %v1746_v5  ;;  %558 = vmatprep.subr.bf16.mxu1 %v1770_v14 }
 0x159   :  { %518 = vmatpush1.bf16.msra.mxu0 %v1753_v8  ;;  %559 = vmatpush1.bf16.msra.mxu1 %v1774_v15 }
 0x15a   :  { %519 = vmatprep.subr.bf16.mxu0 %v1757_v9  ;;  %560 = vmatprep.subr.bf16.mxu1 %v1777_v16 }
 0x15d   :  { %520 = vmatpush1.bf16.msra.mxu0 %v1766_v12  ;;  %561 = vmatpush1.bf16.msra.mxu1 %v1786_v19 }
 0x15e   :  { %521 = vmatprep.subr.bf16.mxu0 %v1768_v13  ;;  %562 = vmatprep.subr.bf16.mxu1 %v1789_v20 }
 0x161   :  { %522 = vmatpush1.bf16.msra.mxu0 %v1780_v17  ;;  %563 = vmatpush1.bf16.msra.mxu1 %v1798_v23 }
 0x162   :  { %523 = vmatprep.subr.bf16.mxu0 %v1783_v18  ;;  %564 = vmatprep.subr.bf16.mxu1 %v1801_v24 }
 0x165   :  { %524 = vmatpush1.bf16.msra.mxu0 %v1791_v21  ;;  %565 = vmatpush1.bf16.msra.mxu1 %v1810_v27 }
 0x166   :  { %525 = vmatprep.subr.bf16.mxu0 %v1794_v22  ;;  %566 = vmatprep.subr.bf16.mxu1 %v1813_v28 }
 0x169   :  { %526 = vmatpush1.bf16.msra.mxu0 %v1804_v25  ;;  %567 = vmatpush1.bf16.msra.mxu1 %v1820_v31 }
 0x16a   :  { %527 = vmatprep.subr.bf16.mxu0 %v1807_v26  ;;  %568 = vmatprep.subr.bf16.mxu1 %v1823_v32 }
 0x16d   :  { %528 = vmatpush1.bf16.msra.mxu0 %v1816_v29  ;;  %569 = vmatpush1.bf16.msra.mxu1 %v1827_v34 }
 0x16e   :  { %629 = vmatprep.subr.bf16.mxu0 %v1733_v0  ;;  %670 = vmatprep.subr.bf16.mxu1 %v1748_v6 }
 0x210   :  { %v431_v45 = vpop.f32.mrf.mxu0  ;;  %v472_v46 = vpop.f32.mrf.mxu1 }
 0x211   :  { %v432_v47 = vadd.f32 %v431_v45, %v393_v43  ;;  %v473_v63 = vadd.f32 %v472_v46, %v395_v60 }
 0x212   :  { %v433_v48 = vpop.f32.mrf.mxu0  ;;  %v474_v49 = vpop.f32.mrf.mxu1 }
 0x213   :  { %v1283_v50 = vmul.f32 -1.442695, %v432_v47  ;;  %v434_v51 = vadd.f32 %v433_v48, %v394_v44  ;;  %v475_v59 = vadd.f32 %v474_v49, %v396_v58 }
 0x214   :  { %v435_v52 = vpop.f32.mrf.mxu0  ;;  %v476_v53 = vpop.f32.mrf.mxu1 }
 0x215   :  { %1380 = vpow2.f32 %v1283_v50  ;;  %v1284_v54 = vmul.f32 -1.442695, %v434_v51  ;;  %v1285_v61 = vmul.f32 -1.442695, %v475_v59 }
 0x216   :  { %v436_v55 = vpop.f32.mrf.mxu0  ;;  %v477_v56 = vpop.f32.mrf.mxu1 }
 0x217   :  { %1382 = vpow2.f32 %v1284_v54 }
 0x218   :  { %1384 = vpow2.f32 %v1285_v61 }
 0x222   :  { %v1381_v62 = vpop.eup %1380 }
 0x223   :  { %v482_v30 = vadd.f32 1.0, %v1381_v62 }
 0x224   :  { %v1383_v33 = vpop.eup %1382 }
 0x225   :  { %1386 = vrcp.f32 %v482_v30  ;;  %v488_v35 = vadd.f32 1.0, %v1383_v33  ;;  %v1385_v36 = vpop.eup %1384 }
 0x226   :  { %1388 = vtanh.f32 %v473_v63  ;;  %v495_v41 = vadd.f32 1.0, %v1385_v36  ;;  %v508_v63 = vld [vmem:[#allocation3 + $0x28] sm:$0xff] }
 0x227   :  { %1390 = vrcp.f32 %v488_v35  ;;  %v512_v30 = vunpack.c.h.bf16 %v508_v63  ;;  %v511_v35 = vunpack.c.l.bf16 %v508_v63 }
 0x228   :  { %1392 = vrcp.f32 %v495_v41 }
 0x232   :  { %v1387_v38 = vpop.eup %1386 }
 0x233   :  { %v1389_v39 = vpop.eup %1388 }
 0x234   :  { %v1391_v40 = vpop.eup %1390  ;;  %v499_v42 = vmul.f32 %v1389_v39, %v1387_v38 }
 0x235   :  { %v498_v43 = vmul.f32 %v1391_v40, %v1867_v37  ;;  %v1393_v45 = vpop.eup %1392  ;;  %v507_v37 = vld [vmem:[#allocation3 + $0x20] sm:$0xff] }
 0x236   :  { %v509_v49 = vunpack.c.l.bf16 %v507_v37  ;;  %v510_v50 = vunpack.c.h.bf16 %v507_v37 }
 0x237   :  { %v1905_v44 = vadd.f32 %v499_v42, %v498_v43 }
 0x239   :  { %1394 = vtanh.f32 %v1905_v44 }
 0x246   :  { %v1395_v46 = vpop.eup %1394 }
 0x247   :  { %v502_v47 = vmul.f32 %v1395_v46, %v1393_v45 }
 0x249   :  { %504 = vst [vmem:[#allocation9 + $0x8] sm:$0xff] %v502_v47  ;;  %v505_v48 = vpack.c.bf16 %v502_v47, %v502_v47 }
 0x24b   :  { %546 = vmatmul.mubr.bf16.vlgmr.msra.gmra.mxu0 %v505_v48  ;;  %587 = vmatmul.mubr.bf16.vlgmr.msra.gmra.mxu1 %v505_v48 }
 0x24c   :  { %630 = vmatpush1.bf16.msra.mxu0 %v1735_v1  ;;  %671 = vmatpush1.bf16.msra.mxu1 %v1750_v7 }
 0x24d   :  { %631 = vmatprep.subr.bf16.mxu0 %v1740_v3  ;;  %672 = vmatprep.subr.bf16.mxu1 %v1760_v10 }
 0x24e   :  { %661 = vmatprep.mubr.bf16.mxu0 %v1680_v2  ;;  %702 = vmatprep.mubr.bf16.mxu1 %v1680_v2 }
 0x250   :  { %632 = vmatpush1.bf16.msra.mxu0 %v1743_v4  ;;  %673 = vmatpush1.bf16.msra.mxu1 %v1762_v11 }
 0x251   :  { %633 = vmatprep.subr.bf16.mxu0 %v1746_v5  ;;  %674 = vmatprep.subr.bf16.mxu1 %v1770_v14 }
 0x254   :  { %634 = vmatpush1.bf16.msra.mxu0 %v1753_v8  ;;  %675 = vmatpush1.bf16.msra.mxu1 %v1774_v15 }
 0x255   :  { %635 = vmatprep.subr.bf16.mxu0 %v1757_v9  ;;  %676 = vmatprep.subr.bf16.mxu1 %v1777_v16 }
 0x258   :  { %636 = vmatpush1.bf16.msra.mxu0 %v1766_v12  ;;  %677 = vmatpush1.bf16.msra.mxu1 %v1786_v19 }
 0x259   :  { %637 = vmatprep.subr.bf16.mxu0 %v1768_v13  ;;  %678 = vmatprep.subr.bf16.mxu1 %v1789_v20 }
 0x25c   :  { %638 = vmatpush1.bf16.msra.mxu0 %v1780_v17  ;;  %679 = vmatpush1.bf16.msra.mxu1 %v1798_v23 }
 0x25d   :  { %639 = vmatprep.subr.bf16.mxu0 %v1783_v18  ;;  %680 = vmatprep.subr.bf16.mxu1 %v1801_v24 }
 0x260   :  { %640 = vmatpush1.bf16.msra.mxu0 %v1791_v21  ;;  %681 = vmatpush1.bf16.msra.mxu1 %v1810_v27 }
 0x261   :  { %641 = vmatprep.subr.bf16.mxu0 %v1794_v22  ;;  %682 = vmatprep.subr.bf16.mxu1 %v1813_v28 }
 0x264   :  { %642 = vmatpush1.bf16.msra.mxu0 %v1804_v25  ;;  %683 = vmatpush1.bf16.msra.mxu1 %v1820_v31 }
 0x265   :  { %643 = vmatprep.subr.bf16.mxu0 %v1807_v26  ;;  %684 = vmatprep.subr.bf16.mxu1 %v1823_v32 }
 0x268   :  { %644 = vmatpush1.bf16.msra.mxu0 %v1816_v29  ;;  %685 = vmatpush1.bf16.msra.mxu1 %v1827_v34 }
 0x269   :  { %745 = vmatprep.subr.bf16.mxu0 %v1733_v0  ;;  %786 = vmatprep.subr.bf16.mxu1 %v1748_v6 }
 0x30b   :  { %v547_v51 = vpop.f32.mrf.mxu0  ;;  %v588_v52 = vpop.f32.mrf.mxu1 }
 0x30c   :  { %v548_v53 = vadd.f32 %v547_v51, %v509_v49  ;;  %v589_v39 = vadd.f32 %v588_v52, %v511_v35 }
 0x30d   :  { %v549_v54 = vpop.f32.mrf.mxu0  ;;  %v590_v55 = vpop.f32.mrf.mxu1 }
 0x30e   :  { %v1286_v56 = vmul.f32 -1.442695, %v548_v53  ;;  %v550_v57 = vadd.f32 %v549_v54, %v510_v50  ;;  %v591_v33 = vadd.f32 %v590_v55, %v512_v30 }
 0x30f   :  { %v551_v58 = vpop.f32.mrf.mxu0  ;;  %v592_v59 = vpop.f32.mrf.mxu1 }
 0x310   :  { %1396 = vpow2.f32 %v1286_v56  ;;  %v1287_v60 = vmul.f32 -1.442695, %v550_v57  ;;  %v1288_v36 = vmul.f32 -1.442695, %v591_v33 }
 0x311   :  { %v552_v61 = vpop.f32.mrf.mxu0  ;;  %v593_v62 = vpop.f32.mrf.mxu1 }
 0x312   :  { %1398 = vpow2.f32 %v1287_v60 }
 0x313   :  { %1400 = vpow2.f32 %v1288_v36 }
 0x31d   :  { %v1397_v38 = vpop.eup %1396 }
 0x31e   :  { %v598_v40 = vadd.f32 1.0, %v1397_v38 }
 0x31f   :  { %v1399_v41 = vpop.eup %1398 }
 0x320   :  { %1402 = vrcp.f32 %v598_v40  ;;  %v604_v42 = vadd.f32 1.0, %v1399_v41  ;;  %v1401_v43 = vpop.eup %1400 }
 0x321   :  { %1404 = vtanh.f32 %v589_v39  ;;  %v611_v48 = vadd.f32 1.0, %v1401_v43  ;;  %v624_v39 = vld [vmem:[#allocation3 + $0x38] sm:$0xff] }
 0x322   :  { %1406 = vrcp.f32 %v604_v42  ;;  %v628_v40 = vunpack.c.h.bf16 %v624_v39  ;;  %v627_v42 = vunpack.c.l.bf16 %v624_v39 }
 0x323   :  { %1408 = vrcp.f32 %v611_v48 }
 0x32d   :  { %v1403_v45 = vpop.eup %1402 }
 0x32e   :  { %v1405_v46 = vpop.eup %1404 }
 0x32f   :  { %v1407_v47 = vpop.eup %1406  ;;  %v615_v37 = vmul.f32 %v1405_v46, %v1403_v45 }
 0x330   :  { %v614_v49 = vmul.f32 %v1407_v47, %v1905_v44  ;;  %v1409_v51 = vpop.eup %1408  ;;  %v623_v44 = vld [vmem:[#allocation3 + $0x30] sm:$0xff] }
 0x331   :  { %v625_v55 = vunpack.c.l.bf16 %v623_v44  ;;  %v626_v56 = vunpack.c.h.bf16 %v623_v44 }
 0x332   :  { %v1943_v50 = vadd.f32 %v615_v37, %v614_v49 }
 0x334   :  { %1410 = vtanh.f32 %v1943_v50 }
 0x341   :  { %v1411_v52 = vpop.eup %1410 }
 0x342   :  { %v618_v53 = vmul.f32 %v1411_v52, %v1409_v51 }
 0x344   :  { %620 = vst [vmem:[#allocation9 + $0x10] sm:$0xff] %v618_v53  ;;  %v621_v54 = vpack.c.bf16 %v618_v53, %v618_v53 }
 0x346   :  { %662 = vmatmul.mubr.bf16.vlgmr.msra.gmra.mxu0 %v621_v54  ;;  %703 = vmatmul.mubr.bf16.vlgmr.msra.gmra.mxu1 %v621_v54 }
 0x347   :  { %746 = vmatpush1.bf16.msra.mxu0 %v1735_v1  ;;  %787 = vmatpush1.bf16.msra.mxu1 %v1750_v7 }
 0x348   :  { %747 = vmatprep.subr.bf16.mxu0 %v1740_v3  ;;  %788 = vmatprep.subr.bf16.mxu1 %v1760_v10 }
 0x349   :  { %777 = vmatprep.mubr.bf16.mxu0 %v1680_v2  ;;  %818 = vmatprep.mubr.bf16.mxu1 %v1680_v2 }
 0x34b   :  { %748 = vmatpush1.bf16.msra.mxu0 %v1743_v4  ;;  %789 = vmatpush1.bf16.msra.mxu1 %v1762_v11 }
 0x34c   :  { %749 = vmatprep.subr.bf16.mxu0 %v1746_v5  ;;  %790 = vmatprep.subr.bf16.mxu1 %v1770_v14 }
 0x34f   :  { %750 = vmatpush1.bf16.msra.mxu0 %v1753_v8  ;;  %791 = vmatpush1.bf16.msra.mxu1 %v1774_v15 }
 0x350   :  { %751 = vmatprep.subr.bf16.mxu0 %v1757_v9  ;;  %792 = vmatprep.subr.bf16.mxu1 %v1777_v16 }
 0x353   :  { %752 = vmatpush1.bf16.msra.mxu0 %v1766_v12  ;;  %793 = vmatpush1.bf16.msra.mxu1 %v1786_v19 }
 0x354   :  { %753 = vmatprep.subr.bf16.mxu0 %v1768_v13  ;;  %794 = vmatprep.subr.bf16.mxu1 %v1789_v20 }
 0x357   :  { %754 = vmatpush1.bf16.msra.mxu0 %v1780_v17  ;;  %795 = vmatpush1.bf16.msra.mxu1 %v1798_v23 }
 0x358   :  { %755 = vmatprep.subr.bf16.mxu0 %v1783_v18  ;;  %796 = vmatprep.subr.bf16.mxu1 %v1801_v24 }
 0x35b   :  { %756 = vmatpush1.bf16.msra.mxu0 %v1791_v21  ;;  %797 = vmatpush1.bf16.msra.mxu1 %v1810_v27 }
 0x35c   :  { %757 = vmatprep.subr.bf16.mxu0 %v1794_v22  ;;  %798 = vmatprep.subr.bf16.mxu1 %v1813_v28 }
 0x35f   :  { %758 = vmatpush1.bf16.msra.mxu0 %v1804_v25  ;;  %799 = vmatpush1.bf16.msra.mxu1 %v1820_v31 }
 0x360   :  { %759 = vmatprep.subr.bf16.mxu0 %v1807_v26  ;;  %800 = vmatprep.subr.bf16.mxu1 %v1823_v32 }
 0x363   :  { %760 = vmatpush1.bf16.msra.mxu0 %v1816_v29  ;;  %801 = vmatpush1.bf16.msra.mxu1 %v1827_v34 }
 0x364   :  { %861 = vmatprep.subr.bf16.mxu0 %v1733_v0  ;;  %902 = vmatprep.subr.bf16.mxu1 %v1748_v6 }
 0x406   :  { %v663_v57 = vpop.f32.mrf.mxu0  ;;  %v704_v58 = vpop.f32.mrf.mxu1 }
 0x407   :  { %v664_v59 = vadd.f32 %v663_v57, %v625_v55  ;;  %v705_v46 = vadd.f32 %v704_v58, %v627_v42 }
 0x408   :  { %v665_v60 = vpop.f32.mrf.mxu0  ;;  %v706_v61 = vpop.f32.mrf.mxu1 }
 0x409   :  { %v1289_v62 = vmul.f32 -1.442695, %v664_v59  ;;  %v666_v63 = vadd.f32 %v665_v60, %v626_v56  ;;  %v707_v41 = vadd.f32 %v706_v61, %v628_v40 }
 0x40a   :  { %v667_v30 = vpop.f32.mrf.mxu0  ;;  %v708_v33 = vpop.f32.mrf.mxu1 }
 0x40b   :  { %1412 = vpow2.f32 %v1289_v62  ;;  %v1290_v35 = vmul.f32 -1.442695, %v666_v63  ;;  %v1291_v43 = vmul.f32 -1.442695, %v707_v41 }
 0x40c   :  { %v668_v36 = vpop.f32.mrf.mxu0  ;;  %v709_v38 = vpop.f32.mrf.mxu1 }
 0x40d   :  { %1414 = vpow2.f32 %v1290_v35 }
 0x40e   :  { %1416 = vpow2.f32 %v1291_v43 }
 0x418   :  { %v1413_v45 = vpop.eup %1412 }
 0x419   :  { %v714_v47 = vadd.f32 1.0, %v1413_v45  ;;  %v740_v45 = vld [vmem:[#allocation3 + $0x48] sm:$0xff] }
 0x41a   :  { %v1415_v48 = vpop.eup %1414 }
 0x41b   :  { %1418 = vrcp.f32 %v714_v47  ;;  %v720_v37 = vadd.f32 1.0, %v1415_v48  ;;  %v1417_v49 = vpop.eup %1416 }
 0x41c   :  { %1420 = vtanh.f32 %v705_v46  ;;  %v727_v54 = vadd.f32 1.0, %v1417_v49  ;;  %v743_v46 = vunpack.c.l.bf16 %v740_v45 }
 0x41d   :  { %1422 = vrcp.f32 %v720_v37 }
 0x41e   :  { %1424 = vrcp.f32 %v727_v54 }
 0x428   :  { %v1419_v51 = vpop.eup %1418 }
 0x429   :  { %v1421_v52 = vpop.eup %1420 }
 0x42a   :  { %v1423_v53 = vpop.eup %1422  ;;  %v731_v44 = vmul.f32 %v1421_v52, %v1419_v51 }
 0x42b   :  { %v730_v55 = vmul.f32 %v1423_v53, %v1943_v50  ;;  %v1425_v57 = vpop.eup %1424 }
 0x42d   :  { %v1981_v56 = vadd.f32 %v731_v44, %v730_v55 }
 0x42f   :  { %1426 = vtanh.f32 %v1981_v56 }
 0x43c   :  { %v1427_v58 = vpop.eup %1426 }
 0x43d   :  { %v734_v59 = vmul.f32 %v1427_v58, %v1425_v57 }
 0x43f   :  { %736 = vst [vmem:[#allocation9 + $0x18] sm:$0xff] %v734_v59  ;;  %v737_v60 = vpack.c.bf16 %v734_v59, %v734_v59 }
 0x441   :  { %778 = vmatmul.mubr.bf16.vlgmr.msra.gmra.mxu0 %v737_v60  ;;  %819 = vmatmul.mubr.bf16.vlgmr.msra.gmra.mxu1 %v737_v60 }
 0x442   :  { %862 = vmatpush1.bf16.msra.mxu0 %v1735_v1  ;;  %903 = vmatpush1.bf16.msra.mxu1 %v1750_v7  ;;  %v739_v1 = vld [vmem:[#allocation3 + $0x40] sm:$0xff] }
 0x443   :  { %863 = vmatprep.subr.bf16.mxu0 %v1740_v3  ;;  %904 = vmatprep.subr.bf16.mxu1 %v1760_v10  ;;  %v741_v50 = vunpack.c.l.bf16 %v739_v1  ;;  %v742_v61 = vunpack.c.h.bf16 %v739_v1 }
 0x444   :  { %893 = vmatprep.mubr.bf16.mxu0 %v1680_v2  ;;  %934 = vmatprep.mubr.bf16.mxu1 %v1680_v2 }
 0x446   :  { %864 = vmatpush1.bf16.msra.mxu0 %v1743_v4  ;;  %905 = vmatpush1.bf16.msra.mxu1 %v1762_v11 }
 0x447   :  { %865 = vmatprep.subr.bf16.mxu0 %v1746_v5  ;;  %906 = vmatprep.subr.bf16.mxu1 %v1770_v14 }
 0x44a   :  { %866 = vmatpush1.bf16.msra.mxu0 %v1753_v8  ;;  %907 = vmatpush1.bf16.msra.mxu1 %v1774_v15 }
 0x44b   :  { %867 = vmatprep.subr.bf16.mxu0 %v1757_v9  ;;  %908 = vmatprep.subr.bf16.mxu1 %v1777_v16 }
 0x44e   :  { %868 = vmatpush1.bf16.msra.mxu0 %v1766_v12  ;;  %909 = vmatpush1.bf16.msra.mxu1 %v1786_v19 }
 0x44f   :  { %869 = vmatprep.subr.bf16.mxu0 %v1768_v13  ;;  %910 = vmatprep.subr.bf16.mxu1 %v1789_v20 }
 0x452   :  { %870 = vmatpush1.bf16.msra.mxu0 %v1780_v17  ;;  %911 = vmatpush1.bf16.msra.mxu1 %v1798_v23 }
 0x453   :  { %871 = vmatprep.subr.bf16.mxu0 %v1783_v18  ;;  %912 = vmatprep.subr.bf16.mxu1 %v1801_v24 }
 0x456   :  { %872 = vmatpush1.bf16.msra.mxu0 %v1791_v21  ;;  %913 = vmatpush1.bf16.msra.mxu1 %v1810_v27 }
 0x457   :  { %873 = vmatprep.subr.bf16.mxu0 %v1794_v22  ;;  %914 = vmatprep.subr.bf16.mxu1 %v1813_v28 }
 0x45a   :  { %874 = vmatpush1.bf16.msra.mxu0 %v1804_v25  ;;  %915 = vmatpush1.bf16.msra.mxu1 %v1820_v31 }
 0x45b   :  { %875 = vmatprep.subr.bf16.mxu0 %v1807_v26  ;;  %916 = vmatprep.subr.bf16.mxu1 %v1823_v32 }
 0x45e   :  { %876 = vmatpush1.bf16.msra.mxu0 %v1816_v29  ;;  %917 = vmatpush1.bf16.msra.mxu1 %v1827_v34 }
 0x45f   :  { %977 = vmatprep.subr.bf16.mxu0 %v1733_v0  ;;  %1018 = vmatprep.subr.bf16.mxu1 %v1748_v6  ;;  %v744_v0 = vunpack.c.h.bf16 %v740_v45  ;;  %v1496_v45 = vld [vmem:[#allocation2 + $0xc4] ss:$16 sps:$4 sm:$0xff]  }
 0x501   :  { %v779_v62 = vpop.f32.mrf.mxu0  ;;  %v820_v63 = vpop.f32.mrf.mxu1 }
 0x502   :  { %v780_v30 = vadd.f32 %v779_v62, %v741_v50  ;;  %v821_v37 = vadd.f32 %v820_v63, %v743_v46  ;;  %v2022_v63 = vld [vmem:[#allocation2 + $0xe0] ss:$16 sps:$4 sm:$0xff]   ;;  %v1499_v46 = vld [vmem:[#allocation2 + $0xc8] ss:$16 sps:$4 sm:$0xff]  }
 0x503   :  { %v781_v33 = vpop.f32.mrf.mxu0  ;;  %v822_v35 = vpop.f32.mrf.mxu1 }
 0x504   :  { %v1292_v36 = vmul.f32 -1.442695, %v780_v30  ;;  %v782_v38 = vadd.f32 %v781_v33, %v742_v61  ;;  %v823_v6 = vadd.f32 %v822_v35, %v744_v0  ;;  %v1497_v0 = vld [vmem:[#allocation2 + $0xcc] ss:$16 sps:$4 sm:$0xff]  }
 0x505   :  { %v783_v39 = vpop.f32.mrf.mxu0  ;;  %v824_v40 = vpop.f32.mrf.mxu1 }
 0x506   :  { %1428 = vpow2.f32 %v1292_v36  ;;  %v1293_v41 = vmul.f32 -1.442695, %v782_v38  ;;  %v1294_v47 = vmul.f32 -1.442695, %v823_v6  ;;  %v1498_v6 = vld [vmem:[#allocation2 + $0xc0] ss:$16 sps:$4 sm:$0xff]  }
 0x507   :  { %v784_v42 = vpop.f32.mrf.mxu0  ;;  %v825_v43 = vpop.f32.mrf.mxu1 }
 0x508   :  { %1430 = vpow2.f32 %v1293_v41  ;;  %v1495_v43 = vld [vmem:[#allocation2 + $0xe8] ss:$16 sps:$4 sm:$0xff]  }
 0x509   :  { %1432 = vpow2.f32 %v1294_v47  ;;  %v1500_v47 = vld [vmem:[#allocation2 + $0xa4] ss:$16 sps:$4 sm:$0xff]  }
 0x513   :  { %v1429_v48 = vpop.eup %1428 }
 0x514   :  { %v830_v49 = vadd.f32 1.0, %v1429_v48  ;;  %v1501_v48 = vld [vmem:[#allocation2 + $0xac] ss:$16 sps:$4 sm:$0xff]  }
 0x515   :  { %v1431_v51 = vpop.eup %1430 }
 0x516   :  { %1434 = vrcp.f32 %v830_v49  ;;  %v836_v52 = vadd.f32 1.0, %v1431_v51  ;;  %v1433_v53 = vpop.eup %1432  ;;  %v1503_v49 = vld [vmem:[#allocation2 + $0xa8] ss:$16 sps:$4 sm:$0xff]   ;;  %v1504_v51 = vld [vmem:[#allocation2 + $0x84] ss:$16 sps:$4 sm:$0xff]  }
 0x517   :  { %1436 = vtanh.f32 %v821_v37  ;;  %v843_v57 = vadd.f32 1.0, %v1433_v53  ;;  %v1502_v37 = vld [vmem:[#allocation2 + $0xa0] ss:$16 sps:$4 sm:$0xff]  }
 0x518   :  { %1438 = vrcp.f32 %v836_v52  ;;  %v1505_v52 = vld [vmem:[#allocation2 + $0x8c] ss:$16 sps:$4 sm:$0xff]   ;;  %v1506_v53 = vld [vmem:[#allocation2 + $0x80] ss:$16 sps:$4 sm:$0xff]  }
 0x519   :  { %1440 = vrcp.f32 %v843_v57  ;;  %v1511_v57 = vld [vmem:[#allocation2 + $0x68] ss:$16 sps:$4 sm:$0xff]  }
 0x523   :  { %v1435_v54 = vpop.eup %1434 }
 0x524   :  { %v1437_v44 = vpop.eup %1436 }
 0x525   :  { %v1439_v55 = vpop.eup %1438  ;;  %v847_v58 = vmul.f32 %v1437_v44, %v1435_v54  ;;  %v1507_v54 = vld [vmem:[#allocation2 + $0x88] ss:$16 sps:$4 sm:$0xff]   ;;  %v1509_v44 = vld [vmem:[#allocation2 + $0x6c] ss:$16 sps:$4 sm:$0xff]  }
 0x526   :  { %v846_v59 = vmul.f32 %v1439_v55, %v1981_v56  ;;  %v1441_v1 = vpop.eup %1440  ;;  %v1510_v55 = vld [vmem:[#allocation2 + $0x60] ss:$16 sps:$4 sm:$0xff]  }
 0x528   :  { %v2019_v60 = vadd.f32 %v847_v58, %v846_v59  ;;  %v1512_v58 = vld [vmem:[#allocation2 + $0x44] ss:$16 sps:$4 sm:$0xff]   ;;  %v1513_v59 = vld [vmem:[#allocation2 + $0x4c] ss:$16 sps:$4 sm:$0xff]  }
 0x52a   :  { %1442 = vtanh.f32 %v2019_v60 }
 0x537   :  { %v1443_v50 = vpop.eup %1442 }
 0x538   :  { %v850_v61 = vmul.f32 %v1443_v50, %v1441_v1  ;;  %v1515_v1 = vld [vmem:[#allocation2 + $0x48] ss:$16 sps:$4 sm:$0xff]   ;;  %v1516_v50 = vld [vmem:[#allocation2 + $0x24] ss:$16 sps:$4 sm:$0xff]  }
 0x53a   :  { %852 = vst [vmem:[#allocation9 + $0x20] sm:$0xff] %v850_v61  ;;  %v853_v62 = vpack.c.bf16 %v850_v61, %v850_v61  ;;  %v1517_v61 = vld [vmem:[#allocation2 + $0x2c] ss:$16 sps:$4 sm:$0xff]  }
 0x53c   :  { %894 = vmatmul.mubr.bf16.vlgmr.msra.gmra.mxu0 %v853_v62  ;;  %935 = vmatmul.mubr.bf16.vlgmr.msra.gmra.mxu1 %v853_v62  ;;  %v1518_v62 = vld [vmem:[#allocation2 + $0x20] ss:$16 sps:$4 sm:$0xff]  }
 0x53d   :  { %978 = vmatpush1.bf16.msra.mxu0 %v2022_v63  ;;  %1019 = vmatpush1.bf16.msra.mxu1 %v1750_v7 }
 0x53e   :  { %979 = vmatprep.subr.bf16.mxu0 %v1740_v3  ;;  %1020 = vmatprep.subr.bf16.mxu1 %v1760_v10  ;;  %v1493_v3 = vld [vmem:[#allocation2 + $0xe4] ss:$16 sps:$4 sm:$0xff]  }
 0x53f   :  { %1009 = vmatprep.mubr.bf16.mxu0 %v1680_v2  ;;  %1050 = vmatprep.mubr.bf16.mxu1 %v1680_v2 }
 0x541   :  { %980 = vmatpush1.bf16.msra.mxu0 %v1743_v4  ;;  %1021 = vmatpush1.bf16.msra.mxu1 %v1762_v11  ;;  %v1494_v4 = vld [vmem:[#allocation2 + $0xec] ss:$16 sps:$4 sm:$0xff]  }
 0x542   :  { %981 = vmatprep.subr.bf16.mxu0 %v1746_v5  ;;  %1022 = vmatprep.subr.bf16.mxu1 %v1770_v14  ;;  %v855_v5 = vld [vmem:[#allocation3 + $0x50] sm:$0xff] }
 0x543   :  { %v857_v7 = vunpack.c.l.bf16 %v855_v5 }
 0x545   :  { %982 = vmatpush1.bf16.msra.mxu0 %v1753_v8  ;;  %1023 = vmatpush1.bf16.msra.mxu1 %v1774_v15  ;;  %v858_v8 = vunpack.c.h.bf16 %v855_v5  ;;  %v1522_v5 = vld [vmem:[#allocation2] ss:$16 sps:$4 sm:$0xff]  }
 0x546   :  { %983 = vmatprep.subr.bf16.mxu0 %v1757_v9  ;;  %1024 = vmatprep.subr.bf16.mxu1 %v1777_v16 }
 0x549   :  { %984 = vmatpush1.bf16.msra.mxu0 %v1766_v12  ;;  %1025 = vmatpush1.bf16.msra.mxu1 %v1786_v19 }
 0x54a   :  { %985 = vmatprep.subr.bf16.mxu0 %v1768_v13  ;;  %1026 = vmatprep.subr.bf16.mxu1 %v1789_v20 }
 0x54d   :  { %986 = vmatpush1.bf16.msra.mxu0 %v1780_v17  ;;  %1027 = vmatpush1.bf16.msra.mxu1 %v1798_v23 }
 0x54e   :  { %987 = vmatprep.subr.bf16.mxu0 %v1783_v18  ;;  %1028 = vmatprep.subr.bf16.mxu1 %v1801_v24 }
 0x551   :  { %988 = vmatpush1.bf16.msra.mxu0 %v1791_v21  ;;  %1029 = vmatpush1.bf16.msra.mxu1 %v1810_v27  ;;  %v856_v21 = vld [vmem:[#allocation3 + $0x58] sm:$0xff] }
 0x552   :  { %989 = vmatprep.subr.bf16.mxu0 %v1794_v22  ;;  %1030 = vmatprep.subr.bf16.mxu1 %v1813_v28  ;;  %v860_v22 = vunpack.c.h.bf16 %v856_v21  ;;  %v859_v24 = vunpack.c.l.bf16 %v856_v21 }
 0x555   :  { %990 = vmatpush1.bf16.msra.mxu0 %v1804_v25  ;;  %1031 = vmatpush1.bf16.msra.mxu1 %v1820_v31 }
 0x556   :  { %991 = vmatprep.subr.bf16.mxu0 %v1807_v26  ;;  %1032 = vmatprep.subr.bf16.mxu1 %v1823_v32 }
 0x559   :  { %992 = vmatpush1.bf16.msra.mxu0 %v1816_v29  ;;  %1033 = vmatpush1.bf16.msra.mxu1 %v1827_v34 }
 0x55a   :  { %1093 = vmatprep.subr.bf16.mxu0 %v1493_v3  ;;  %1134 = vmatprep.subr.bf16.mxu1 %v1494_v4  ;;  %v1520_v3 = vld [vmem:[#allocation2 + $0x4] ss:$16 sps:$4 sm:$0xff]   ;;  %v1521_v4 = vld [vmem:[#allocation2 + $0xc] ss:$16 sps:$4 sm:$0xff]  }
 0x5fc   :  { %v895_v9 = vpop.f32.mrf.mxu0  ;;  %v936_v10 = vpop.f32.mrf.mxu1 }
 0x5fd   :  { %v896_v11 = vadd.f32 %v895_v9, %v857_v7  ;;  %v937_v27 = vadd.f32 %v936_v10, %v859_v24  ;;  %v1523_v7 = vld [vmem:[#allocation2 + $0x8] ss:$16 sps:$4 sm:$0xff]  }
 0x5fe   :  { %v897_v12 = vpop.f32.mrf.mxu0  ;;  %v938_v13 = vpop.f32.mrf.mxu1 }
 0x5ff   :  { %v1295_v14 = vmul.f32 -1.442695, %v896_v11  ;;  %v898_v15 = vadd.f32 %v897_v12, %v858_v8  ;;  %v939_v23 = vadd.f32 %v938_v13, %v860_v22  ;;  %v971_v8 = vld [vmem:[#allocation3 + $0x60] sm:$0xff] }
 0x600   :  { %v899_v16 = vpop.f32.mrf.mxu0  ;;  %v940_v17 = vpop.f32.mrf.mxu1  ;;  %v973_v9 = vunpack.c.l.bf16 %v971_v8  ;;  %v974_v10 = vunpack.c.h.bf16 %v971_v8 }
 0x601   :  { %1444 = vpow2.f32 %v1295_v14  ;;  %v1296_v18 = vmul.f32 -1.442695, %v898_v15  ;;  %v1297_v25 = vmul.f32 -1.442695, %v939_v23  ;;  %v972_v23 = vld [vmem:[#allocation3 + $0x68] sm:$0xff] }
 0x602   :  { %v900_v19 = vpop.f32.mrf.mxu0  ;;  %v941_v20 = vpop.f32.mrf.mxu1  ;;  %v976_v24 = vunpack.c.h.bf16 %v972_v23 }
 0x603   :  { %1446 = vpow2.f32 %v1296_v18 }
 0x604   :  { %1448 = vpow2.f32 %v1297_v25 }
 0x60e   :  { %v1445_v26 = vpop.eup %1444 }
 0x60f   :  { %v946_v28 = vadd.f32 1.0, %v1445_v26  ;;  %v975_v26 = vunpack.c.l.bf16 %v972_v23 }
 0x610   :  { %v1447_v29 = vpop.eup %1446 }
 0x611   :  { %1450 = vrcp.f32 %v946_v28  ;;  %v952_v31 = vadd.f32 1.0, %v1447_v29  ;;  %v1449_v32 = vpop.eup %1448 }
 0x612   :  { %1452 = vtanh.f32 %v937_v27  ;;  %v959_v33 = vadd.f32 1.0, %v1449_v32 }
 0x613   :  { %1454 = vrcp.f32 %v952_v31 }
 0x614   :  { %1456 = vrcp.f32 %v959_v33 }
 0x61e   :  { %v1451_v34 = vpop.eup %1450 }
 0x61f   :  { %v1453_v56 = vpop.eup %1452 }
 0x620   :  { %v1455_v30 = vpop.eup %1454  ;;  %v963_v35 = vmul.f32 %v1453_v56, %v1451_v34 }
 0x621   :  { %v962_v36 = vmul.f32 %v1455_v30, %v2019_v60  ;;  %v1457_v39 = vpop.eup %1456  ;;  %v1514_v60 = vld [vmem:[#allocation2 + $0x40] ss:$16 sps:$4 sm:$0xff]  }
 0x623   :  { %v2057_v38 = vadd.f32 %v963_v35, %v962_v36 }
 0x625   :  { %1458 = vtanh.f32 %v2057_v38 }
 0x632   :  { %v1459_v40 = vpop.eup %1458 }
 0x633   :  { %v966_v41 = vmul.f32 %v1459_v40, %v1457_v39 }
 0x635   :  { %968 = vst [vmem:[#allocation9 + $0x28] sm:$0xff] %v966_v41  ;;  %v969_v42 = vpack.c.bf16 %v966_v41, %v966_v41 }
 0x637   :  { %1010 = vmatmul.mubr.bf16.vlgmr.msra.gmra.mxu0 %v969_v42  ;;  %1051 = vmatmul.mubr.bf16.vlgmr.msra.gmra.mxu1 %v969_v42 }
 0x638   :  { %1094 = vmatpush1.bf16.msra.mxu0 %v2022_v63  ;;  %1135 = vmatpush1.bf16.msra.mxu1 %v1495_v43  ;;  %v1519_v63 = vld [vmem:[#allocation2 + $0x28] ss:$16 sps:$4 sm:$0xff]  }
 0x639   :  { %1095 = vmatprep.subr.bf16.mxu0 %v1496_v45  ;;  %1136 = vmatprep.subr.bf16.mxu1 %v1497_v0 }
 0x63a   :  { %1125 = vmatprep.mubr.bf16.mxu0 %v1680_v2  ;;  %1166 = vmatprep.mubr.bf16.mxu1 %v1680_v2  ;;  %v1508_v2 = vld [vmem:[#allocation2 + $0x64] ss:$16 sps:$4 sm:$0xff]  }
 0x63c   :  { %1096 = vmatpush1.bf16.msra.mxu0 %v1498_v6  ;;  %1137 = vmatpush1.bf16.msra.mxu1 %v1499_v46  ;;  %v1087_v6 = vld [vmem:[#allocation3 + $0x70] sm:$0xff] }
 0x63d   :  { %1097 = vmatprep.subr.bf16.mxu0 %v1500_v47  ;;  %1138 = vmatprep.subr.bf16.mxu1 %v1501_v48  ;;  %v1089_v46 = vunpack.c.l.bf16 %v1087_v6  ;;  %v1090_v47 = vunpack.c.h.bf16 %v1087_v6 }
 0x640   :  { %1098 = vmatpush1.bf16.msra.mxu0 %v1502_v37  ;;  %1139 = vmatpush1.bf16.msra.mxu1 %v1503_v49 }
 0x641   :  { %1099 = vmatprep.subr.bf16.mxu0 %v1504_v51  ;;  %1140 = vmatprep.subr.bf16.mxu1 %v1505_v52 }
 0x644   :  { %1100 = vmatpush1.bf16.msra.mxu0 %v1506_v53  ;;  %1141 = vmatpush1.bf16.msra.mxu1 %v1507_v54 }
 0x645   :  { %1101 = vmatprep.subr.bf16.mxu0 %v1508_v2  ;;  %1142 = vmatprep.subr.bf16.mxu1 %v1509_v44 }
 0x648   :  { %1102 = vmatpush1.bf16.msra.mxu0 %v1510_v55  ;;  %1143 = vmatpush1.bf16.msra.mxu1 %v1511_v57 }
 0x649   :  { %1103 = vmatprep.subr.bf16.mxu0 %v1512_v58  ;;  %1144 = vmatprep.subr.bf16.mxu1 %v1513_v59  ;;  %v1088_v58 = vld [vmem:[#allocation3 + $0x78] sm:$0xff] }
 0x64a   :  { %v1092_v59 = vunpack.c.h.bf16 %v1088_v58 }
 0x64c   :  { %1104 = vmatpush1.bf16.msra.mxu0 %v1514_v60  ;;  %1145 = vmatpush1.bf16.msra.mxu1 %v1515_v1  ;;  %v1091_v1 = vunpack.c.l.bf16 %v1088_v58 }
 0x64d   :  { %1105 = vmatprep.subr.bf16.mxu0 %v1516_v50  ;;  %1146 = vmatprep.subr.bf16.mxu1 %v1517_v61 }
 0x650   :  { %1106 = vmatpush1.bf16.msra.mxu0 %v1518_v62  ;;  %1147 = vmatpush1.bf16.msra.mxu1 %v1519_v63 }
 0x651   :  { %1107 = vmatprep.subr.bf16.mxu0 %v1520_v3  ;;  %1148 = vmatprep.subr.bf16.mxu1 %v1521_v4 }
 0x654   :  { %1108 = vmatpush1.bf16.msra.mxu0 %v1522_v5  ;;  %1149 = vmatpush1.bf16.msra.mxu1 %v1523_v7 }
 0x6f7   :  { %v1011_v11 = vpop.f32.mrf.mxu0  ;;  %v1052_v12 = vpop.f32.mrf.mxu1 }
 0x6f8   :  { %v1012_v13 = vadd.f32 %v1011_v11, %v973_v9  ;;  %v1053_v29 = vadd.f32 %v1052_v12, %v975_v26 }
 0x6f9   :  { %v1013_v14 = vpop.f32.mrf.mxu0  ;;  %v1054_v15 = vpop.f32.mrf.mxu1 }
 0x6fa   :  { %v1298_v16 = vmul.f32 -1.442695, %v1012_v13  ;;  %v1014_v17 = vadd.f32 %v1013_v14, %v974_v10  ;;  %v1055_v25 = vadd.f32 %v1054_v15, %v976_v24 }
 0x6fb   :  { %v1015_v18 = vpop.f32.mrf.mxu0  ;;  %v1056_v19 = vpop.f32.mrf.mxu1 }
 0x6fc   :  { %1460 = vpow2.f32 %v1298_v16  ;;  %v1299_v20 = vmul.f32 -1.442695, %v1014_v17  ;;  %v1300_v27 = vmul.f32 -1.442695, %v1055_v25 }
 0x6fd   :  { %v1016_v21 = vpop.f32.mrf.mxu0  ;;  %v1057_v22 = vpop.f32.mrf.mxu1 }
 0x6fe   :  { %1462 = vpow2.f32 %v1299_v20 }
 0x6ff   :  { %1464 = vpow2.f32 %v1300_v27 }
 0x709   :  { %v1461_v28 = vpop.eup %1460 }
 0x70a   :  { %v1062_v31 = vadd.f32 1.0, %v1461_v28 }
 0x70b   :  { %v1463_v32 = vpop.eup %1462 }
 0x70c   :  { %1466 = vrcp.f32 %v1062_v31  ;;  %v1068_v34 = vadd.f32 1.0, %v1463_v32  ;;  %v1465_v56 = vpop.eup %1464 }
 0x70d   :  { %1468 = vtanh.f32 %v1053_v29  ;;  %v1075_v36 = vadd.f32 1.0, %v1465_v56 }
 0x70e   :  { %1470 = vrcp.f32 %v1068_v34 }
 0x70f   :  { %1472 = vrcp.f32 %v1075_v36 }
 0x719   :  { %v1467_v30 = vpop.eup %1466 }
 0x71a   :  { %v1469_v33 = vpop.eup %1468 }
 0x71b   :  { %v1471_v35 = vpop.eup %1470  ;;  %v1079_v39 = vmul.f32 %v1469_v33, %v1467_v30 }
 0x71c   :  { %v1078_v40 = vmul.f32 %v1471_v35, %v2057_v38  ;;  %v1473_v42 = vpop.eup %1472 }
 0x71e   :  { %v1080_v41 = vadd.f32 %v1079_v39, %v1078_v40 }
 0x720   :  { %1474 = vtanh.f32 %v1080_v41 }
 0x72d   :  { %v1475_v43 = vpop.eup %1474 }
 0x72e   :  { %v1082_v45 = vmul.f32 %v1475_v43, %v1473_v42 }
 0x730   :  { %1084 = vst [vmem:[#allocation9 + $0x30] sm:$0xff] %v1082_v45  ;;  %v1085_v0 = vpack.c.bf16 %v1082_v45, %v1082_v45 }
 0x732   :  { %1126 = vmatmul.mubr.bf16.vlgmr.msra.gmra.mxu0 %v1085_v0  ;;  %1167 = vmatmul.mubr.bf16.vlgmr.msra.gmra.mxu1 %v1085_v0 }
 0x7f2   :  { %v1127_v48 = vpop.f32.mrf.mxu0  ;;  %v1168_v37 = vpop.f32.mrf.mxu1 }
 0x7f3   :  { %v1128_v49 = vadd.f32 %v1127_v48, %v1089_v46  ;;  %v1169_v62 = vadd.f32 %v1168_v37, %v1091_v1 }
 0x7f4   :  { %v1129_v51 = vpop.f32.mrf.mxu0  ;;  %v1170_v52 = vpop.f32.mrf.mxu1 }
 0x7f5   :  { %v1301_v53 = vmul.f32 -1.442695, %v1128_v49  ;;  %v1130_v38 = vadd.f32 %v1129_v51, %v1090_v47  ;;  %v1171_v60 = vadd.f32 %v1170_v52, %v1092_v59 }
 0x7f6   :  { %v1131_v54 = vpop.f32.mrf.mxu0  ;;  %v1172_v2 = vpop.f32.mrf.mxu1 }
 0x7f7   :  { %1476 = vpow2.f32 %v1301_v53  ;;  %v1302_v44 = vmul.f32 -1.442695, %v1130_v38  ;;  %v1303_v50 = vmul.f32 -1.442695, %v1171_v60 }
 0x7f8   :  { %v1132_v55 = vpop.f32.mrf.mxu0  ;;  %v1173_v57 = vpop.f32.mrf.mxu1 }
 0x7f9   :  { %1478 = vpow2.f32 %v1302_v44 }
 0x7fa   :  { %1480 = vpow2.f32 %v1303_v50 }
 0x804   :  { %v1477_v61 = vpop.eup %1476 }
 0x805   :  { %v1178_v63 = vadd.f32 1.0, %v1477_v61 }
 0x806   :  { %v1479_v3 = vpop.eup %1478 }
 0x807   :  { %1482 = vrcp.f32 %v1178_v63  ;;  %v1184_v4 = vadd.f32 1.0, %v1479_v3  ;;  %v1481_v5 = vpop.eup %1480 }
 0x808   :  { %1484 = vtanh.f32 %v1169_v62  ;;  %v1191_v10 = vadd.f32 1.0, %v1481_v5 }
 0x809   :  { %1486 = vrcp.f32 %v1184_v4 }
 0x80a   :  { %1488 = vrcp.f32 %v1191_v10 }
 0x814   :  { %v1483_v7 = vpop.eup %1482 }
 0x815   :  { %v1485_v8 = vpop.eup %1484 }
 0x816   :  { %v1487_v9 = vpop.eup %1486  ;;  %v1195_v11 = vmul.f32 %v1485_v8, %v1483_v7 }
 0x817   :  { %v1194_v12 = vmul.f32 %v1487_v9, %v1080_v41  ;;  %v1489_v14 = vpop.eup %1488 }
 0x819   :  { %v1196_v13 = vadd.f32 %v1195_v11, %v1194_v12 }
 0x81b   :  { %1490 = vtanh.f32 %v1196_v13  ;;  %1202 = vst [vmem:[#allocation12] sm:$0xff] %v1196_v13 }
 0x828   :  { %v1491_v15 = vpop.eup %1490 }
 0x829   :  { %v1198_v16 = vmul.f32 %v1491_v15, %v1489_v14 }
 0x82b   :  { %1200 = vst [vmem:[#allocation9 + $0x38] sm:$0xff] %v1198_v16  ;;  %1201 = vst [vmem:[#allocation10] sm:$0xff] %v1198_v16 }
 0x82c   :  { %1615 = shalt.err (!%p1612_p10)
}
 0x82d   :  { %1224 = dma.vmem_to_hbm [thread:$0]  %s1222_s3, 128, %s2078_s5, [#allocation11]  }
 0x82e   :  { %s1624_s24 = scalar_lea.vmem %s1209_s18, 1024  ;;  %p1629_p12 = scmp.lt.s32.totalorder %s1209_s18, %s1209_s18 }
 0x82f   :  { %p1625_p11 = scmp.ne.s32.totalorder %s1209_s18, %s1624_s24  ;;  %p1630_p13 = scmp.lt.s32.totalorder %s1624_s24, %s1624_s24 }
 0x831   :  { %p1631_p0 = por %p1630_p13, %p1629_p12 }
 0x833   :  { %p1632_p1 = pnand %p1631_p0, %p1625_p11 }
 0x835   :  { %1635 = shalt.err (!%p1632_p1)
}
 0x836   :  { %s1684_s25 = smov 128   ;;  %s1685_s26 = smov 8  }
 0x837   :  { %1214 = dma.vmem_to_hbm [thread:$0]  %s1209_s18, 1024, %s2077_s4, [#allocation5], %s1684_s25, %s1684_s25, %s1685_s26  }
 0x838   :  { %s1644_s29 = scalar_lea.vmem %s1232_s20, 128  ;;  %p1649_p3 = scmp.lt.s32.totalorder %s1232_s20, %s1232_s20 }
 0x839   :  { %p1645_p2 = scmp.ne.s32.totalorder %s1232_s20, %s1644_s29  ;;  %p1650_p4 = scmp.lt.s32.totalorder %s1644_s29, %s1644_s29 }
 0x83b   :  { %p1651_p5 = por %p1650_p4, %p1649_p3 }
 0x83d   :  { %p1652_p6 = pnand %p1651_p5, %p1645_p2 }
 0x83f   :  { %1655 = shalt.err (!%p1652_p6)
}
 0x840   :  { %1234 = dma.vmem_to_hbm [thread:$0]  %s1232_s20, 128, %s2079_s6, [#allocation11]  }
 0x841   :  { %1670 = dma.done.wait [#allocation5], 1024  }
 0x842   :  { %1671 = vsyncadd [#allocation5], 4294966272 }
 0x843   :  { %1672 = dma.done.wait [#allocation11], 256  }
 0x844   :  { %1673 = vsyncadd [#allocation11], 4294967040 }
 0x845   :  { %1244 = vsyncpa [#allocation4], 1 }
 0x846   :  { %1245 = vsyncpa [#allocation7], 1 }
 0x847   :  { %1246 = vsyncpa [#allocation5], 1 }
 0x848   :  { %1247 = vsyncpa [#allocation11], 1 }

</bundles_post_ra>
